<compile_context>
chip_gen: v5e
topology: v5e:2x2
jax: 0.10.0
libtpu: 0.0.40
codegen_flags: <defaults>
</compile_context>

<pallas_src>
import functools

import jax
import jax.numpy as jnp
from jax.experimental import pallas as pl
from jax.experimental.pallas import tpu as pltpu


def mha_kernel(q_ref, k_ref, v_ref, wq_ref, wk_ref, wv_ref, wfc_ref,
               gamma_ref, beta_ref, out_ref, *, n_head, d_k, d_v, eps):
    Bt, L, d_in = q_ref.shape

    # Flatten (batch, seq) rows for the projections.  Leading-dim merge only
    # (lane dim untouched); layout-preserving while L is a multiple of the f32
    # sublane tile (8) — true here (L == 8).
    q2 = q_ref[...].reshape(Bt * L, d_in)
    k2 = k_ref[...].reshape(Bt * L, d_in)
    v2 = v_ref[...].reshape(Bt * L, d_in)
    residual = q2                                      # pre-projection q

    # Fused full-width projections (heads live contiguously in the lane dim).
    # w_qs already carries the 1/sqrt(d_k) softmax temperature.
    qp = jnp.dot(q2, wq_ref[...], preferred_element_type=jnp.float32)  # (Bt*L, H*d_k)
    kp = jnp.dot(k2, wk_ref[...], preferred_element_type=jnp.float32)  # (Bt*L, H*d_k)
    vp = jnp.dot(v2, wv_ref[...], preferred_element_type=jnp.float32)  # (Bt*L, H*d_v)

    # Per-head attention.  Static, tiny loop (n_head=2); the head split is a
    # static lane slice — cheap XLU/copy work on otherwise-idle units.
    # TODO(synk): at model scale make heads an "arbitrary" grid axis instead.
    head_outs = []
    for h in range(n_head):
        qh = qp[:, h * d_k:(h + 1) * d_k].reshape(Bt, L, d_k)
        kh = kp[:, h * d_k:(h + 1) * d_k].reshape(Bt, L, d_k)
        vh = vp[:, h * d_v:(h + 1) * d_v].reshape(Bt, L, d_v)

        # Batched q @ k^T contracting on d_k — no explicit transpose of k.
        s = jnp.einsum('bqd,bkd->bqk', qh, kh,
                       preferred_element_type=jnp.float32)             # (Bt, L, L)

        # Numerically stable softmax over the key axis (exact reciprocal:
        # approx=True risks the 1e-4 parity tolerance).
        s = s - jnp.max(s, axis=-1, keepdims=True)
        p = jnp.exp(s)
        p = p * pl.reciprocal(jnp.sum(p, axis=-1, keepdims=True), approx=False)

        oh = jnp.einsum('bqk,bkd->bqd', p, vh,
                        preferred_element_type=jnp.float32)            # (Bt, L, d_v)
        head_outs.append(oh.reshape(Bt * L, d_v))

    # Merge heads along the lane dim and run ONE full-width fc matmul.
    cat = head_outs[0] if n_head == 1 else jnp.concatenate(head_outs, axis=-1)
    fc_out = jnp.dot(cat, wfc_ref[...], preferred_element_type=jnp.float32)  # (Bt*L, d_in)

    # Output dropout is identity (eval mode); residual + LayerNorm(eps=1e-6,
    # biased variance), matching nn.LayerNorm.
    o = fc_out + residual
    mean = jnp.mean(o, axis=-1, keepdims=True)
    var = jnp.mean((o - mean) ** 2, axis=-1, keepdims=True)
    o = (o - mean) * jax.lax.rsqrt(var + eps)
    o = o * gamma_ref[...] + beta_ref[...]
    out_ref[...] = o.reshape(Bt, L, d_in).astype(out_ref.dtype)


def _num_tensorcores():
    """Best-effort TensorCores-per-chip (v5e/v6e: 1, v7x: 2); defaults to 1."""
    try:
        info = pltpu.get_tpu_info()
    except Exception:
        return 1
    for attr in ("num_cores", "tensorcores_per_chip", "cores_per_chip",
                 "num_tensorcores", "core_count"):
        n = getattr(info, attr, None)
        if isinstance(n, int) and n >= 1:
            return n
    return 1


def multi_head_attention(q, k, v, params, *, n_head, d_k, d_v, eps=1e-6,
                         block_b=None):
    B, L, d_in = q.shape
    wq, wk, wv, wfc, gamma, beta = params

    # Static (XLA-side, free) parameter prep: fold the 1/sqrt(d_k) softmax
    # temperature into w_qs once; weights stay in their original full-width
    # layout so the kernel can do fused projections.
    scale = 1.0 / (d_k ** 0.5)
    wq_s = wq * scale                      # (d_in, n_head*d_k)
    gamma2 = gamma.reshape(1, d_in)
    beta2 = beta.reshape(1, d_in)

    # Generation-aware batch tiling:
    #  * single-TC chips (v5e/v6e): one grid step (block_b = B) — avoids
    #    ~0.35 us/step overhead that bought nothing,
    #  * multi-TC chips (v7x): one slab per TensorCore, even grid count.
    if block_b is None:
        ncores = _num_tensorcores()
        if ncores > 1 and B % ncores == 0:
            block_b = B // ncores
        else:
            block_b = B
    assert B % block_b == 0, "block_b must divide the batch size"
    n_steps = B // block_b
    dims = ("parallel",) if n_steps > 1 else ("arbitrary",)
    # TODO(synk): on v7x, pltpu.CORE_PARALLEL on this axis is the explicit way
    # to pin one slab per TensorCore; "parallel" kept here for portability.

    kernel = functools.partial(mha_kernel, n_head=n_head, d_k=d_k, d_v=d_v,
                               eps=eps)

    seq_spec = pl.BlockSpec((block_b, L, d_in), lambda b: (b, 0, 0))
    wqk_spec = pl.BlockSpec((d_in, n_head * d_k), lambda b: (0, 0))
    wv_spec = pl.BlockSpec((d_in, n_head * d_v), lambda b: (0, 0))
    wfc_spec = pl.BlockSpec((n_head * d_v, d_in), lambda b: (0, 0))
    ln_spec = pl.BlockSpec((1, d_in), lambda b: (0, 0))
    # Constant-index weight/LN blocks: at model scale add
    # pipeline_mode=pl.Buffered(1) to halve their VMEM footprint (negligible at
    # these (32,32) weights, so left at the default double-buffering).

    return pl.pallas_call(
        kernel,
        out_shape=jax.ShapeDtypeStruct((B, L, d_in), q.dtype),
        grid_spec=pltpu.PrefetchScalarGridSpec(
            num_scalar_prefetch=0,
            grid=(n_steps,),
            in_specs=[seq_spec, seq_spec, seq_spec,
                      wqk_spec, wqk_spec, wv_spec, wfc_spec,
                      ln_spec, ln_spec],
            out_specs=seq_spec,
        ),
        compiler_params=pltpu.CompilerParams(dimension_semantics=dims),
    )(q, k, v, wq_s, wk, wv, wfc, gamma2, beta2)


def reference(q, k, v, params, *, n_head, d_k, d_v, eps=1e-6):
    """Pure-JAX reference mirroring the PyTorch forward (dropout = identity)."""
    wq, wk, wv, wfc, gamma, beta = params
    B, Lq, d_in = q.shape
    residual = q
    qp = (q @ wq).reshape(B, Lq, n_head, d_k).transpose(0, 2, 1, 3)
    kp = (k @ wk).reshape(B, k.shape[1], n_head, d_k).transpose(0, 2, 1, 3)
    vp = (v @ wv).reshape(B, v.shape[1], n_head, d_v).transpose(0, 2, 1, 3)
    attn = jnp.einsum('bhqd,bhkd->bhqk', qp / (d_k ** 0.5), kp)
    attn = jax.nn.softmax(attn, axis=-1)
    out = jnp.einsum('bhqk,bhkd->bhqd', attn, vp)
    out = out.transpose(0, 2, 1, 3).reshape(B, Lq, n_head * d_v)
    out = out @ wfc + residual
    mean = jnp.mean(out, axis=-1, keepdims=True)
    var = jnp.mean((out - mean) ** 2, axis=-1, keepdims=True)
    out = (out - mean) / jnp.sqrt(var + eps)
    return out * gamma[0] + beta[0]


if __name__ == "__main__":
    B, L, d_in = 8, 8, 32
    n_head, d_k, d_v = 2, 16, 16

    key = jax.random.PRNGKey(0)
    ks = jax.random.split(key, 8)
    q = jax.random.normal(ks[0], (B, L, d_in), jnp.float32)
    k = jax.random.normal(ks[1], (B, L, d_in), jnp.float32)
    v = jax.random.normal(ks[2], (B, L, d_in), jnp.float32)

    # Deterministic parameter init (shapes from the module __init__).
    wq = jax.random.normal(ks[3], (d_in, n_head * d_k), jnp.float32) * 0.1
    wk = jax.random.normal(ks[4], (d_in, n_head * d_k), jnp.float32) * 0.1
    wv = jax.random.normal(ks[5], (d_in, n_head * d_v), jnp.float32) * 0.1
    wfc = jax.random.normal(ks[6], (n_head * d_v, d_in), jnp.float32) * 0.1
    gamma = jnp.ones((1, d_in), jnp.float32)
    beta = jnp.zeros((1, d_in), jnp.float32)
    params = (wq, wk, wv, wfc, gamma, beta)

    out = multi_head_attention(q, k, v, params, n_head=n_head, d_k=d_k, d_v=d_v)
    out = jax.block_until_ready(out)

    ref = reference(q, k, v, params, n_head=n_head, d_k=d_k, d_v=d_v)
    assert out.shape == ref.shape
    assert jnp.allclose(out, ref, atol=1e-4, rtol=1e-4), (
        float(jnp.max(jnp.abs(out - ref))))

    print("KERNEL_OK")
</pallas_src>

<mosaic_0001>
module attributes {stable_mosaic.version = 11 : i64} {
  func.func @mha_kernel(%arg0: i32, %arg1: memref<8x8x32xf32, #tpu.memory_space<vmem>>, %arg2: memref<8x8x32xf32, #tpu.memory_space<vmem>>, %arg3: memref<8x8x32xf32, #tpu.memory_space<vmem>>, %arg4: memref<32x32xf32, #tpu.memory_space<vmem>>, %arg5: memref<32x32xf32, #tpu.memory_space<vmem>>, %arg6: memref<32x32xf32, #tpu.memory_space<vmem>>, %arg7: memref<32x32xf32, #tpu.memory_space<vmem>>, %arg8: memref<1x32xf32, #tpu.memory_space<vmem>>, %arg9: memref<1x32xf32, #tpu.memory_space<vmem>>, %arg10: memref<8x8x32xf32, #tpu.memory_space<vmem>>) attributes {dimension_semantics = [#tpu.dimension_semantics<arbitrary>], iteration_bounds = array<i64: 1>, scalar_prefetch = 0 : i64, scratch_operands = 0 : i64, tpu.core_type = #tpu.core_type<tc>, window_params = [{transform_indices = @transform_0, window_bounds = array<i64: 8, 8, 32>}, {transform_indices = @transform_1, window_bounds = array<i64: 8, 8, 32>}, {transform_indices = @transform_2, window_bounds = array<i64: 8, 8, 32>}, {pipeline_mode = #tpu.pipeline_mode<synchronous>, transform_indices = @transform_3, window_bounds = array<i64: 32, 32>}, {pipeline_mode = #tpu.pipeline_mode<synchronous>, transform_indices = @transform_4, window_bounds = array<i64: 32, 32>}, {pipeline_mode = #tpu.pipeline_mode<synchronous>, transform_indices = @transform_5, window_bounds = array<i64: 32, 32>}, {pipeline_mode = #tpu.pipeline_mode<synchronous>, transform_indices = @transform_6, window_bounds = array<i64: 32, 32>}, {pipeline_mode = #tpu.pipeline_mode<synchronous>, transform_indices = @transform_7, window_bounds = array<i64: 1, 32>}, {pipeline_mode = #tpu.pipeline_mode<synchronous>, transform_indices = @transform_8, window_bounds = array<i64: 1, 32>}, {transform_indices = @transform_9, window_bounds = array<i64: 8, 8, 32>}]} {
    %c0 = arith.constant 0 : index
    %c0_0 = arith.constant 0 : index
    %c0_1 = arith.constant 0 : index
    %0 = vector.load %arg1[%c0, %c0_0, %c0_1] : memref<8x8x32xf32, #tpu.memory_space<vmem>>, vector<8x8x32xf32>
    %1 = vector.shape_cast %0 : vector<8x8x32xf32> to vector<64x32xf32>
    %c0_2 = arith.constant 0 : index
    %c0_3 = arith.constant 0 : index
    %c0_4 = arith.constant 0 : index
    %2 = vector.load %arg2[%c0_2, %c0_3, %c0_4] : memref<8x8x32xf32, #tpu.memory_space<vmem>>, vector<8x8x32xf32>
    %3 = vector.shape_cast %2 : vector<8x8x32xf32> to vector<64x32xf32>
    %c0_5 = arith.constant 0 : index
    %c0_6 = arith.constant 0 : index
    %c0_7 = arith.constant 0 : index
    %4 = vector.load %arg3[%c0_5, %c0_6, %c0_7] : memref<8x8x32xf32, #tpu.memory_space<vmem>>, vector<8x8x32xf32>
    %5 = vector.shape_cast %4 : vector<8x8x32xf32> to vector<64x32xf32>
    %c0_8 = arith.constant 0 : index
    %c0_9 = arith.constant 0 : index
    %6 = vector.load %arg4[%c0_8, %c0_9] : memref<32x32xf32, #tpu.memory_space<vmem>>, vector<32x32xf32>
    %cst = arith.constant dense<0.000000e+00> : vector<64x32xf32>
    %7 = tpu.matmul %1, %6, %cst {dimension_numbers = #tpu.dot_dimension_numbers<[1], [0], [0], [1], [0, 0, 1, 1], [], []>} : vector<64x32xf32>, vector<32x32xf32>, vector<64x32xf32> -> vector<64x32xf32>
    %c0_10 = arith.constant 0 : index
    %c0_11 = arith.constant 0 : index
    %8 = vector.load %arg5[%c0_10, %c0_11] : memref<32x32xf32, #tpu.memory_space<vmem>>, vector<32x32xf32>
    %cst_12 = arith.constant dense<0.000000e+00> : vector<64x32xf32>
    %9 = tpu.matmul %3, %8, %cst_12 {dimension_numbers = #tpu.dot_dimension_numbers<[1], [0], [0], [1], [0, 0, 1, 1], [], []>} : vector<64x32xf32>, vector<32x32xf32>, vector<64x32xf32> -> vector<64x32xf32>
    %c0_13 = arith.constant 0 : index
    %c0_14 = arith.constant 0 : index
    %10 = vector.load %arg6[%c0_13, %c0_14] : memref<32x32xf32, #tpu.memory_space<vmem>>, vector<32x32xf32>
    %cst_15 = arith.constant dense<0.000000e+00> : vector<64x32xf32>
    %11 = tpu.matmul %5, %10, %cst_15 {dimension_numbers = #tpu.dot_dimension_numbers<[1], [0], [0], [1], [0, 0, 1, 1], [], []>} : vector<64x32xf32>, vector<32x32xf32>, vector<64x32xf32> -> vector<64x32xf32>
    %12 = vector.extract_strided_slice %7 {offsets = [0, 0], sizes = [64, 16], strides = [1, 1]} : vector<64x32xf32> to vector<64x16xf32>
    %13 = vector.shape_cast %12 : vector<64x16xf32> to vector<8x8x16xf32>
    %14 = vector.extract_strided_slice %9 {offsets = [0, 0], sizes = [64, 16], strides = [1, 1]} : vector<64x32xf32> to vector<64x16xf32>
    %15 = vector.shape_cast %14 : vector<64x16xf32> to vector<8x8x16xf32>
    %16 = vector.extract_strided_slice %11 {offsets = [0, 0], sizes = [64, 16], strides = [1, 1]} : vector<64x32xf32> to vector<64x16xf32>
    %17 = vector.shape_cast %16 : vector<64x16xf32> to vector<8x8x16xf32>
    "tpu.trace_start"() <{level = 10 : i32, message = "bqd,bkd->bqk"}> : () -> ()
    %cst_16 = arith.constant dense<0.000000e+00> : vector<8x8x8xf32>
    %18 = tpu.matmul %13, %15, %cst_16 {dimension_numbers = #tpu.dot_dimension_numbers<[2], [2], [1], [1], [0, 0, 0, 1, 1, 1], [0], [0]>} : vector<8x8x16xf32>, vector<8x8x16xf32>, vector<8x8x8xf32> -> vector<8x8x8xf32>
    "tpu.trace_stop"() : () -> ()
    %cst_17 = arith.constant dense<0xFF800000> : vector<8x8xf32>
    %19 = vector.multi_reduction <maximumf>, %18, %cst_17 [2] : vector<8x8x8xf32> to vector<8x8xf32>
    %20 = vector.shape_cast %19 : vector<8x8xf32> to vector<8x8x1xf32>
    %21 = vector.broadcast %20 : vector<8x8x1xf32> to vector<8x8x8xf32>
    %22 = arith.subf %18, %21 : vector<8x8x8xf32>
    %23 = math.exp %22 : vector<8x8x8xf32>
    %cst_18 = arith.constant dense<0.000000e+00> : vector<8x8xf32>
    %24 = vector.multi_reduction <add>, %23, %cst_18 [2] : vector<8x8x8xf32> to vector<8x8xf32>
    %25 = vector.shape_cast %24 : vector<8x8xf32> to vector<8x8x1xf32>
    %26 = tpu.reciprocal %25 : vector<8x8x1xf32> -> vector<8x8x1xf32>
    %27 = vector.broadcast %26 : vector<8x8x1xf32> to vector<8x8x8xf32>
    %28 = arith.mulf %23, %27 : vector<8x8x8xf32>
    "tpu.trace_start"() <{level = 10 : i32, message = "bqk,bkd->bqd"}> : () -> ()
    %cst_19 = arith.constant dense<0.000000e+00> : vector<8x8x16xf32>
    %29 = tpu.matmul %28, %17, %cst_19 {dimension_numbers = #tpu.dot_dimension_numbers<[2], [1], [1], [2], [0, 0, 0, 1, 1, 2], [0], [0]>} : vector<8x8x8xf32>, vector<8x8x16xf32>, vector<8x8x16xf32> -> vector<8x8x16xf32>
    "tpu.trace_stop"() : () -> ()
    %30 = vector.shape_cast %29 : vector<8x8x16xf32> to vector<64x16xf32>
    %31 = vector.extract_strided_slice %7 {offsets = [0, 16], sizes = [64, 16], strides = [1, 1]} : vector<64x32xf32> to vector<64x16xf32>
    %32 = vector.shape_cast %31 : vector<64x16xf32> to vector<8x8x16xf32>
    %33 = vector.extract_strided_slice %9 {offsets = [0, 16], sizes = [64, 16], strides = [1, 1]} : vector<64x32xf32> to vector<64x16xf32>
    %34 = vector.shape_cast %33 : vector<64x16xf32> to vector<8x8x16xf32>
    %35 = vector.extract_strided_slice %11 {offsets = [0, 16], sizes = [64, 16], strides = [1, 1]} : vector<64x32xf32> to vector<64x16xf32>
    %36 = vector.shape_cast %35 : vector<64x16xf32> to vector<8x8x16xf32>
    "tpu.trace_start"() <{level = 10 : i32, message = "bqd,bkd->bqk"}> : () -> ()
    %cst_20 = arith.constant dense<0.000000e+00> : vector<8x8x8xf32>
    %37 = tpu.matmul %32, %34, %cst_20 {dimension_numbers = #tpu.dot_dimension_numbers<[2], [2], [1], [1], [0, 0, 0, 1, 1, 1], [0], [0]>} : vector<8x8x16xf32>, vector<8x8x16xf32>, vector<8x8x8xf32> -> vector<8x8x8xf32>
    "tpu.trace_stop"() : () -> ()
    %cst_21 = arith.constant dense<0xFF800000> : vector<8x8xf32>
    %38 = vector.multi_reduction <maximumf>, %37, %cst_21 [2] : vector<8x8x8xf32> to vector<8x8xf32>
    %39 = vector.shape_cast %38 : vector<8x8xf32> to vector<8x8x1xf32>
    %40 = vector.broadcast %39 : vector<8x8x1xf32> to vector<8x8x8xf32>
    %41 = arith.subf %37, %40 : vector<8x8x8xf32>
    %42 = math.exp %41 : vector<8x8x8xf32>
    %cst_22 = arith.constant dense<0.000000e+00> : vector<8x8xf32>
    %43 = vector.multi_reduction <add>, %42, %cst_22 [2] : vector<8x8x8xf32> to vector<8x8xf32>
    %44 = vector.shape_cast %43 : vector<8x8xf32> to vector<8x8x1xf32>
    %45 = tpu.reciprocal %44 : vector<8x8x1xf32> -> vector<8x8x1xf32>
    %46 = vector.broadcast %45 : vector<8x8x1xf32> to vector<8x8x8xf32>
    %47 = arith.mulf %42, %46 : vector<8x8x8xf32>
    "tpu.trace_start"() <{level = 10 : i32, message = "bqk,bkd->bqd"}> : () -> ()
    %cst_23 = arith.constant dense<0.000000e+00> : vector<8x8x16xf32>
    %48 = tpu.matmul %47, %36, %cst_23 {dimension_numbers = #tpu.dot_dimension_numbers<[2], [1], [1], [2], [0, 0, 0, 1, 1, 2], [0], [0]>} : vector<8x8x8xf32>, vector<8x8x16xf32>, vector<8x8x16xf32> -> vector<8x8x16xf32>
    "tpu.trace_stop"() : () -> ()
    %49 = vector.shape_cast %48 : vector<8x8x16xf32> to vector<64x16xf32>
    %50 = tpu.concatenate %30, %49 in 1 : vector<64x16xf32>, vector<64x16xf32> -> vector<64x32xf32>
    %c0_24 = arith.constant 0 : index
    %c0_25 = arith.constant 0 : index
    %51 = vector.load %arg7[%c0_24, %c0_25] : memref<32x32xf32, #tpu.memory_space<vmem>>, vector<32x32xf32>
    %cst_26 = arith.constant dense<0.000000e+00> : vector<64x32xf32>
    %52 = tpu.matmul %50, %51, %cst_26 {dimension_numbers = #tpu.dot_dimension_numbers<[1], [0], [0], [1], [0, 0, 1, 1], [], []>} : vector<64x32xf32>, vector<32x32xf32>, vector<64x32xf32> -> vector<64x32xf32>
    %53 = arith.addf %52, %1 : vector<64x32xf32>
    %cst_27 = arith.constant dense<0.000000e+00> : vector<64xf32>
    %54 = vector.multi_reduction <add>, %53, %cst_27 [1] : vector<64x32xf32> to vector<64xf32>
    %55 = vector.shape_cast %54 : vector<64xf32> to vector<64x1xf32>
    %cst_28 = arith.constant 3.200000e+01 : f32
    %56 = vector.broadcast %cst_28 : f32 to vector<64x1xf32>
    %57 = arith.divf %55, %56 : vector<64x1xf32>
    %58 = vector.broadcast %57 : vector<64x1xf32> to vector<64x32xf32>
    %59 = arith.subf %53, %58 : vector<64x32xf32>
    %60 = arith.mulf %59, %59 : vector<64x32xf32>
    %cst_29 = arith.constant dense<0.000000e+00> : vector<64xf32>
    %61 = vector.multi_reduction <add>, %60, %cst_29 [1] : vector<64x32xf32> to vector<64xf32>
    %62 = vector.shape_cast %61 : vector<64xf32> to vector<64x1xf32>
    %cst_30 = arith.constant 3.200000e+01 : f32
    %63 = vector.broadcast %cst_30 : f32 to vector<64x1xf32>
    %64 = arith.divf %62, %63 : vector<64x1xf32>
    %65 = vector.broadcast %57 : vector<64x1xf32> to vector<64x32xf32>
    %66 = arith.subf %53, %65 : vector<64x32xf32>
    %cst_31 = arith.constant 9.99999997E-7 : f32
    %67 = vector.broadcast %cst_31 : f32 to vector<64x1xf32>
    %68 = arith.addf %64, %67 : vector<64x1xf32>
    %69 = math.rsqrt %68 : vector<64x1xf32>
    %70 = vector.broadcast %69 : vector<64x1xf32> to vector<64x32xf32>
    %71 = arith.mulf %66, %70 : vector<64x32xf32>
    %c0_32 = arith.constant 0 : index
    %c0_33 = arith.constant 0 : index
    %72 = vector.load %arg8[%c0_32, %c0_33] : memref<1x32xf32, #tpu.memory_space<vmem>>, vector<1x32xf32>
    %73 = vector.broadcast %72 : vector<1x32xf32> to vector<64x32xf32>
    %74 = arith.mulf %71, %73 : vector<64x32xf32>
    %c0_34 = arith.constant 0 : index
    %c0_35 = arith.constant 0 : index
    %75 = vector.load %arg9[%c0_34, %c0_35] : memref<1x32xf32, #tpu.memory_space<vmem>>, vector<1x32xf32>
    %76 = vector.broadcast %75 : vector<1x32xf32> to vector<64x32xf32>
    %77 = arith.addf %74, %76 : vector<64x32xf32>
    %78 = vector.shape_cast %77 : vector<64x32xf32> to vector<8x8x32xf32>
    %c0_36 = arith.constant 0 : index
    %c0_37 = arith.constant 0 : index
    %c0_38 = arith.constant 0 : index
    %79 = vector.load %arg10[%c0_36, %c0_37, %c0_38] : memref<8x8x32xf32, #tpu.memory_space<vmem>>, vector<8x8x32xf32>
    tpu.vector_store %arg10[%c0_36, %c0_37, %c0_38], %78 {strides = array<i32>} : memref<8x8x32xf32, #tpu.memory_space<vmem>>, vector<8x8x32xf32>,
    return
  }
  func.func @transform_0(%arg0: i32) -> (i32, i32, i32) {
    %c0_i32 = arith.constant 0 : i32
    %c0_i32_0 = arith.constant 0 : i32
    %c0_i32_1 = arith.constant 0 : i32
    return %arg0, %c0_i32, %c0_i32_0 : i32, i32, i32
  }
  func.func @transform_1(%arg0: i32) -> (i32, i32, i32) {
    %c0_i32 = arith.constant 0 : i32
    %c0_i32_0 = arith.constant 0 : i32
    %c0_i32_1 = arith.constant 0 : i32
    return %arg0, %c0_i32, %c0_i32_0 : i32, i32, i32
  }
  func.func @transform_2(%arg0: i32) -> (i32, i32, i32) {
    %c0_i32 = arith.constant 0 : i32
    %c0_i32_0 = arith.constant 0 : i32
    %c0_i32_1 = arith.constant 0 : i32
    return %arg0, %c0_i32, %c0_i32_0 : i32, i32, i32
  }
  func.func @transform_3(%arg0: i32) -> (i32, i32) {
    %c0_i32 = arith.constant 0 : i32
    %c0_i32_0 = arith.constant 0 : i32
    %c0_i32_1 = arith.constant 0 : i32
    return %c0_i32, %c0_i32_0 : i32, i32
  }
  func.func @transform_4(%arg0: i32) -> (i32, i32) {
    %c0_i32 = arith.constant 0 : i32
    %c0_i32_0 = arith.constant 0 : i32
    %c0_i32_1 = arith.constant 0 : i32
    return %c0_i32, %c0_i32_0 : i32, i32
  }
  func.func @transform_5(%arg0: i32) -> (i32, i32) {
    %c0_i32 = arith.constant 0 : i32
    %c0_i32_0 = arith.constant 0 : i32
    %c0_i32_1 = arith.constant 0 : i32
    return %c0_i32, %c0_i32_0 : i32, i32
  }
  func.func @transform_6(%arg0: i32) -> (i32, i32) {
    %c0_i32 = arith.constant 0 : i32
    %c0_i32_0 = arith.constant 0 : i32
    %c0_i32_1 = arith.constant 0 : i32
    return %c0_i32, %c0_i32_0 : i32, i32
  }
  func.func @transform_7(%arg0: i32) -> (i32, i32) {
    %c0_i32 = arith.constant 0 : i32
    %c0_i32_0 = arith.constant 0 : i32
    %c0_i32_1 = arith.constant 0 : i32
    return %c0_i32, %c0_i32_0 : i32, i32
  }
  func.func @transform_8(%arg0: i32) -> (i32, i32) {
    %c0_i32 = arith.constant 0 : i32
    %c0_i32_0 = arith.constant 0 : i32
    %c0_i32_1 = arith.constant 0 : i32
    return %c0_i32, %c0_i32_0 : i32, i32
  }
  func.func @transform_9(%arg0: i32) -> (i32, i32, i32) {
    %c0_i32 = arith.constant 0 : i32
    %c0_i32_0 = arith.constant 0 : i32
    %c0_i32_1 = arith.constant 0 : i32
    return %arg0, %c0_i32, %c0_i32_0 : i32, i32, i32
  }
}

</mosaic_0001>

<bundles_post_ra>
// kernel: tpu_custom_call.1
= control target key start
LH: loop header
LB: loop body
LE: loop exit
PB: predicated region body
PF: predicated region fallthrough
CT: control target
= control target key end

     0   :  { %14 = vsyncpa [#allocation3], 0  ;;  %s2976_s0 = inlined_call_operand.hbm [shape: f32[8,8,32], index: 0, kind: input, shape index: {}]   ;;  %s2977_s1 = inlined_call_operand.hbm [shape: f32[8,8,32], index: 1, kind: input, shape index: {}]   ;;  %s2978_s2 = inlined_call_operand.hbm [shape: f32[8,8,32], index: 2, kind: input, shape index: {}]   ;;  %s2979_s3 = inlined_call_operand.hbm [shape: f32[32,32], index: 3, kind: input, shape index: {}]   ;;  %s2980_s4 = inlined_call_operand.hbm [shape: f32[32,32], index: 4, kind: input, shape index: {}]   ;;  %s2981_s5 = inlined_call_operand.hbm [shape: f32[32,32], index: 5, kind: input, shape index: {}]   ;;  %s2982_s6 = inlined_call_operand.hbm [shape: f32[32,32], index: 6, kind: input, shape index: {}]   ;;  %s2983_s7 = inlined_call_operand.vmem [shape: f32[1,32], index: 7, kind: input, shape index: {}]   ;;  %s2984_s8 = inlined_call_operand.vmem [shape: f32[1,32], index: 8, kind: input, shape index: {}]   ;;  %s2985_s9 = inlined_call_operand.hbm [shape: f32[8,8,32], index: 9, kind: output, shape index: {}]  }
   0x1   :  { %15 = vsyncpa [#allocation6], 0 }
   0x2   :  { %16 = vsyncpa [#allocation9], 0 }
   0x3   :  { %17 = vsyncpa [#allocation12], 0 }
   0x4   :  { %18 = vsyncpa [#allocation4], 0  ;;  %s36_s11 = sshll.u32 %s2977_s1, 4  ;;  %s2352_s12 = smov [#allocation5]   ;;  %s37_s11 = int_to_ptr.hbm [resolvable:$true] %s36_s11 }
   0x5   :  { %s38_s13 = sshll.u32 %s2352_s12, 4  ;;  %s62_s16 = sshll.u32 %s2979_s3, 4  ;;  %s39_s13 = int_to_ptr.vmem [resolvable:$true] %s38_s13  ;;  %s63_s16 = int_to_ptr.hbm [resolvable:$true] %s62_s16 }
   0x6   :  { %s2353_s17 = smov 128   ;;  %s2354_s18 = smov 8  }
   0x7   :  { %44 = dma.hbm_to_vmem [thread:$0]  %s37_s11, 1024, %s39_s13, [#allocation6], %s2353_s17, %s2353_s17, %s2354_s18  }
   0x8   :  { %s2355_s19 = smov [#allocation8]   ;;  %s88_s1 = sshll.u32 %s2981_s5, 4  ;;  %s89_s1 = int_to_ptr.hbm [resolvable:$true] %s88_s1 }
   0x9   :  { %s64_s20 = sshll.u32 %s2355_s19, 4  ;;  %s23_s24 = sshll.u32 %s2976_s0, 4  ;;  %s65_s20 = int_to_ptr.vmem [resolvable:$true] %s64_s20  ;;  %s24_s24 = int_to_ptr.hbm [resolvable:$true] %s23_s24 }
   0xa   :  { %70 = dma.hbm_to_vmem [thread:$0]  %s63_s16, 512, %s65_s20, [#allocation9], %s2353_s17, %s2353_s17, %s2354_s18  }
   0xb   :  { %s2356_s25 = smov [#allocation11]   ;;  %s2357_s27 = smov [#allocation2]  }
   0xc   :  { %s90_s26 = sshll.u32 %s2356_s25, 4  ;;  %s25_s5 = sshll.u32 %s2357_s27, 4  ;;  %s91_s26 = int_to_ptr.vmem [resolvable:$true] %s90_s26  ;;  %s26_s5 = int_to_ptr.vmem [resolvable:$true] %s25_s5 }
   0xd   :  { %96 = dma.hbm_to_vmem [thread:$0]  %s89_s1, 512, %s91_s26, [#allocation12], %s2353_s17, %s2353_s17, %s2354_s18  }
   0xe   :  { %s49_s30 = sshll.u32 %s2978_s2, 4  ;;  %s75_s11 = sshll.u32 %s2980_s4, 4  ;;  %s50_s30 = int_to_ptr.hbm [resolvable:$true] %s49_s30  ;;  %s76_s11 = int_to_ptr.hbm [resolvable:$true] %s75_s11 }
   0xf   :  { %31 = dma.hbm_to_vmem [thread:$0]  %s24_s24, 1024, %s26_s5, [#allocation3], %s2353_s17, %s2353_s17, %s2354_s18  }
  0x10   :  { %s2358_s12 = smov [#allocation7]   ;;  %s2359_s14 = smov [#allocation10]  }
  0x11   :  { %s51_s13 = sshll.u32 %s2358_s12, 4  ;;  %s77_s2 = sshll.u32 %s2359_s14, 4  ;;  %s52_s13 = int_to_ptr.vmem [resolvable:$true] %s51_s13  ;;  %s78_s2 = int_to_ptr.vmem [resolvable:$true] %s77_s2 }
  0x12   :  { %57 = dma.hbm_to_vmem [thread:$0]  %s50_s30, 1024, %s52_s13, [#allocation6], %s2353_s17, %s2353_s17, %s2354_s18  }
  0x13   :  { %s101_s19 = sshll.u32 %s2982_s6, 4  ;;  %s2360_s4 = smov [#allocation13]   ;;  %s102_s19 = int_to_ptr.hbm [resolvable:$true] %s101_s19 }
  0x14   :  { %83 = dma.hbm_to_vmem [thread:$0]  %s76_s11, 512, %s78_s2, [#allocation9], %s2353_s17, %s2353_s17, %s2354_s18  }
  0x15   :  { %s103_s20 = sshll.u32 %s2360_s4, 4  ;;  %s104_s20 = int_to_ptr.vmem [resolvable:$true] %s103_s20 }
  0x16   :  { %109 = dma.hbm_to_vmem [thread:$0]  %s102_s19, 512, %s104_s20, [#allocation12], %s2353_s17, %s2353_s17, %s2354_s18  }
  0x17   :  { %2342 = dma.done.wait [#allocation3], 1024  }
  0x18   :  { %2343 = vsyncadd [#allocation3], 4294966272 }
  0x19   :  { %2344 = dma.done.wait [#allocation6], 2048  }
  0x1a   :  { %2345 = vsyncadd [#allocation6], 4294965248 }
  0x1b   :  { %2346 = dma.done.wait [#allocation9], 1024  }
  0x1c   :  { %2347 = vsyncadd [#allocation9], 4294966272 }
  0x1d   :  { %2348 = dma.done.wait [#allocation12], 1024  }
  0x1e   :  { %2349 = vsyncadd [#allocation12], 4294966272  ;;  %v169_v0 = vld [vmem:[#allocation8 + $0x18] sm:$0xff]  ;;  %v168_v1 = vld [vmem:[#allocation8 + $0x10] sm:$0xff]  ;;  %vm170_vm0 = vcmask 261120   ;;  %s2361_s6 = smov 112  }
  0x1f   :  { %2018 = vmatpush.msra.mxu1 %v169_v0  ;;  %207 = vmatpush.msra.mxu0 %v169_v0  ;;  %v167_v2 = vld [vmem:[#allocation8 + $0x8] sm:$0xff]  ;;  %v166_v3 = vld [vmem:[#allocation8] sm:$0xff]  ;;  %v239_v6 = vld [vmem:[#allocation10 + $0x18] sm:$0xff]  ;;  %vm374_vm1 = vcmask 130048   ;;  %vm583_vm2 = vcmask 64512   ;;  %s2362_s21 = smov 16  }
  0x20   :  { %2019 = vmatpush.msra.mxu2 %v169_v0  ;;  %v147_v4 = vld [vmem:[#allocation2 + $0x28] sm:$0xff]  ;;  %v142_v5 = vld [vmem:[#allocation2] sm:$0xff]  ;;  %v238_v7 = vld [vmem:[#allocation10 + $0x10] sm:$0xff]  ;;  %s1922_s26 = sshll.u32 %s2985_s9, 4  ;;  %s1923_s26 = int_to_ptr.hbm [resolvable:$true] %s1922_s26 }
  0x21   :  { %2020 = vmatpush.msra.mxu1 %v168_v1  ;;  %208 = vmatpush.msra.mxu0 %v168_v1  ;;  %v237_v8 = vld [vmem:[#allocation10 + $0x8] sm:$0xff]  ;;  %v236_v9 = vld [vmem:[#allocation10] sm:$0xff]  ;;  %v144_v13 = vld [vmem:[#allocation2 + $0x10] sm:$0xff] }
  0x22   :  { %2021 = vmatpush.msra.mxu2 %v168_v1  ;;  %v150_v10 = vld [vmem:[#allocation5] sm:$0xff]  ;;  %v143_v11 = vld [vmem:[#allocation2 + $0x8] sm:$0xff]  ;;  %v148_v14 = vld [vmem:[#allocation2 + $0x30] sm:$0xff] }
  0x23   :  { %2022 = vmatpush.msra.mxu1 %v167_v2  ;;  %209 = vmatpush.msra.mxu0 %v167_v2  ;;  %v151_v12 = vld [vmem:[#allocation5 + $0x8] sm:$0xff]  ;;  %v152_v15 = vld [vmem:[#allocation5 + $0x10] sm:$0xff]  ;;  %v145_v16 = vld [vmem:[#allocation2 + $0x18] sm:$0xff] }
  0x24   :  { %2023 = vmatpush.msra.mxu2 %v167_v2  ;;  %v149_v17 = vld [vmem:[#allocation2 + $0x38] sm:$0xff]  ;;  %v146_v19 = vld [vmem:[#allocation2 + $0x20] sm:$0xff]  ;;  %v155_v21 = vld [vmem:[#allocation5 + $0x28] sm:$0xff] }
  0x25   :  { %2024 = vmatpush.msra.mxu1 %v166_v3  ;;  %210 = vmatpush.msra.mxu0 %v166_v3  ;;  %v153_v18 = vld [vmem:[#allocation5 + $0x18] sm:$0xff]  ;;  %v154_v20 = vld [vmem:[#allocation5 + $0x20] sm:$0xff]  ;;  %v156_v22 = vld [vmem:[#allocation5 + $0x30] sm:$0xff] }
  0x26   :  { %1943 = vmatmul.msk.f32.vlgmr.msra.gmra.mxu1 %vm170_vm0, %v147_v4  ;;  %1938 = vmatmul.msk.f32.vlgmr.msra.gmra.mxu0 %vm170_vm0, %v142_v5  ;;  %v157_v23 = vld [vmem:[#allocation5 + $0x38] sm:$0xff]  ;;  %v307_v53 = vld [vmem:[#allocation11 + $0x10] sm:$0xff]  ;;  %v306_v54 = vld [vmem:[#allocation11 + $0x8] sm:$0xff] }
  0x27   :  { %276 = vmatpush.msrb.mxu1 %v239_v6  ;;  %2025 = vmatpush.msra.mxu2 %v166_v3  ;;  %v308_v52 = vld [vmem:[#allocation11 + $0x18] sm:$0xff]  ;;  %v305_v55 = vld [vmem:[#allocation11] sm:$0xff]  ;;  %v159_v59 = vld [vmem:[#allocation7 + $0x8] sm:$0xff] }
  0x28   :  { %1944 = vmatmul.msk.f32.vlgmr.msra.gmra.mxu2 %vm170_vm0, %v148_v14  ;;  %v158_v57 = vld [vmem:[#allocation7] sm:$0xff]  ;;  %v160_v60 = vld [vmem:[#allocation7 + $0x10] sm:$0xff]  ;;  %v161_v61 = vld [vmem:[#allocation7 + $0x18] sm:$0xff] }
  0x29   :  { %277 = vmatpush.msrb.mxu1 %v238_v7  ;;  %345 = vmatpush.msrb.mxu2 %v308_v52  ;;  %v162_v0 = vld [vmem:[#allocation7 + $0x20] sm:$0xff]  ;;  %v163_v4 = vld [vmem:[#allocation7 + $0x28] sm:$0xff] }
  0x2b   :  { %278 = vmatpush.msrb.mxu1 %v237_v8  ;;  %346 = vmatpush.msrb.mxu2 %v307_v53 }
  0x2d   :  { %279 = vmatpush.msrb.mxu1 %v236_v9  ;;  %347 = vmatpush.msrb.mxu2 %v306_v54  ;;  %v164_v9 = vld [vmem:[#allocation7 + $0x30] sm:$0xff] }
  0x2e   :  { %1946 = vmatmul.msk.f32.vlgmr.msrb.gmra.mxu1 %vm170_vm0, %v150_v10  ;;  %1939 = vmatmul.msk.f32.gmra.mxu0 %vm170_vm0, %v143_v11 }
  0x2f   :  { %348 = vmatpush.msrb.mxu2 %v305_v55 }
  0x30   :  { %1945 = vmatmul.msk.f32.gmra.mxu2 %vm170_vm0, %v149_v17 }
  0x36   :  { %1947 = vmatmul.msk.f32.gmra.mxu1 %vm170_vm0, %v151_v12  ;;  %1940 = vmatmul.msk.f32.gmra.mxu0 %vm170_vm0, %v144_v13 }
  0x38   :  { %1954 = vmatmul.msk.f32.vlgmr.msrb.gmra.mxu2 %vm170_vm0, %v158_v57 }
  0x3e   :  { %1948 = vmatmul.msk.f32.gmra.mxu1 %vm170_vm0, %v152_v15  ;;  %1941 = vmatmul.msk.f32.gmra.mxu0 %vm170_vm0, %v145_v16 }
  0x40   :  { %1955 = vmatmul.msk.f32.gmra.mxu2 %vm170_vm0, %v159_v59 }
  0x46   :  { %1949 = vmatmul.msk.f32.gmra.mxu1 %vm170_vm0, %v153_v18  ;;  %1942 = vmatmul.msk.f32.gmra.mxu0 %vm170_vm0, %v146_v19 }
  0x48   :  { %1956 = vmatmul.msk.f32.gmra.mxu2 %vm170_vm0, %v160_v60 }
  0x4e   :  { %1950 = vmatmul.msk.f32.gmra.mxu1 %vm170_vm0, %v154_v20 }
  0x50   :  { %1957 = vmatmul.msk.f32.gmra.mxu2 %vm170_vm0, %v161_v61 }
  0x56   :  { %1951 = vmatmul.msk.f32.gmra.mxu1 %vm170_vm0, %v155_v21 }
  0x58   :  { %1958 = vmatmul.msk.f32.gmra.mxu2 %vm170_vm0, %v162_v0 }
  0x5e   :  { %1952 = vmatmul.msk.f32.gmra.mxu1 %vm170_vm0, %v156_v22 }
  0x60   :  { %1959 = vmatmul.msk.f32.gmra.mxu2 %vm170_vm0, %v163_v4 }
  0x66   :  { %1953 = vmatmul.msk.f32.gmra.mxu1 %vm170_vm0, %v157_v23 }
  0x68   :  { %1960 = vmatmul.msk.f32.gmra.mxu2 %vm170_vm0, %v164_v9 }
  0xa3   :  { %v2473_v24 = vpop.f32.mrf.mxu1  ;;  %v212_v25 = vpop.f32.mrf.mxu0 }
  0xa4   :  { %960 = vrot.lane.b32.xlu2 %v212_v25, %s2361_s6 }
  0xab   :  { %v281_v26 = vpop.f32.mrf.mxu1  ;;  %v215_v27 = vpop.f32.mrf.mxu0 }
  0xac   :  { %962 = vrot.lane.b32.xlu1 %v281_v26, %s2361_s6  ;;  %1962 = vmatpush.xpose.msk.msra.mxu1 %vm374_vm1, %v281_v26  ;;  %v2505_v37 = vpop.f32.mrf.mxu2 }
  0xad   :  { %988 = vrot.lane.b32.xlu2 %v215_v27, %s2361_s6 }
  0xaf   :  { %1963 = vmatmul.msk.f32.vlgmr.msra.gmra.mxu1 %vm374_vm1, %v212_v25 }
  0xb3   :  { %v284_v28 = vpop.f32.mrf.mxu1  ;;  %v218_v29 = vpop.f32.mrf.mxu0 }
  0xb4   :  { %1964 = vmatpush.xpose.msk.msra.mxu3 %vm374_vm1, %v284_v28  ;;  %990 = vrot.lane.b32.xlu0 %v284_v28, %s2361_s6  ;;  %v2513_v39 = vpop.f32.mrf.mxu2 }
  0xb7   :  { %1965 = vmatmul.msk.f32.vlgmr.msra.gmra.mxu3 %vm374_vm1, %v215_v27 }
  0xbb   :  { %v287_v30 = vpop.f32.mrf.mxu1  ;;  %v221_v31 = vpop.f32.mrf.mxu0 }
  0xbc   :  { %1966 = vmatpush.xpose.msk.msrb.mxu3 %vm374_vm1, %v287_v30  ;;  %1018 = vrot.lane.b32.xlu2 %v287_v30, %s2361_s6  ;;  %v165_v30 = vld [vmem:[#allocation7 + $0x38] sm:$0xff] }
  0xbd   :  { %1044 = vrot.lane.b32.xlu0 %v221_v31, %s2361_s6  ;;  %1961 = vmatmul.msk.f32.gmra.mxu2 %vm170_vm0, %v165_v30 }
  0xbf   :  { %1967 = vmatmul.msk.f32.vlgmr.msrb.gmra.mxu3 %vm374_vm1, %v218_v29 }
  0xc3   :  { %v290_v32 = vpop.f32.mrf.mxu1  ;;  %v2494_v34 = vpop.f32.mrf.mxu0 }
  0xc4   :  { %1968 = vmatpush.xpose.msk.msra.mxu3 %vm374_vm1, %v290_v32  ;;  %1046 = vrot.lane.b32.xlu1 %v290_v32, %s2361_s6 }
  0xc7   :  { %1969 = vmatmul.msk.f32.vlgmr.msra.gmra.mxu3 %vm374_vm1, %v221_v31 }
  0xcb   :  { %v2490_v33 = vpop.f32.mrf.mxu1 }
  0xcc   :  { %1970 = vmatpush.xpose.msk.msrb.mxu3 %vm374_vm1, %v2490_v33 }
  0xcf   :  { %1971 = vmatmul.msk.f32.vlgmr.msrb.gmra.mxu3 %vm374_vm1, %v2494_v34 }
  0xd3   :  { %v296_v35 = vpop.f32.mrf.mxu1 }
  0xd4   :  { %1972 = vmatpush.xpose.msk.msra.mxu3 %vm374_vm1, %v296_v35 }
  0xd7   :  { %1973 = vmatmul.msk.f32.vlgmr.msra.gmra.mxu3 %vm374_vm1, %v2473_v24 }
  0xdb   :  { %v2501_v36 = vpop.f32.mrf.mxu1 }
  0xdc   :  { %1974 = vmatpush.xpose.msk.msrb.mxu3 %vm374_vm1, %v2501_v36 }
  0xdf   :  { %1975 = vmatmul.msk.f32.vlgmr.msrb.gmra.mxu3 %vm374_vm1, %v2505_v37 }
  0xe3   :  { %v2509_v38 = vpop.f32.mrf.mxu1 }
  0xe4   :  { %1976 = vmatpush.xpose.msk.msra.mxu3 %vm374_vm1, %v2509_v38 }
  0xe7   :  { %1977 = vmatmul.msk.f32.vlgmr.msra.gmra.mxu3 %vm374_vm1, %v2513_v39 }
  0xfe   :  { %v2554_v3 = vpop.permute.xlu2 %960 }
 0x107   :  { %v2559_v10 = vpop.permute.xlu2 %988 }
 0x116   :  { %v2568_v14 = vpop.permute.xlu2 %1018 }
 0x11e   :  { %v2557_v5 = vpop.permute.xlu1 %962 }
 0x126   :  { %v2550_v1 = vpop.permute.xlu0 %990 }
 0x12c   :  { %v398_v40 = vpop.f32.mrf.mxu1 }
 0x12d   :  { %v584_v41 = vsel %vm583_vm2, %v398_v40, -inf }
 0x12e   :  { %585 = vmax.xlane.f32.xlu0 %v584_v41 }
 0x12f   :  { %v2552_v2 = vpop.permute.xlu0 %1044 }
 0x136   :  { %v2562_v11 = vpop.permute.xlu1 %1046 }
 0x13a   :  { %v424_v42 = vpop.f32.mrf.mxu3 }
 0x13b   :  { %v587_v43 = vsel %vm583_vm2, %v424_v42, -inf }
 0x13c   :  { %588 = vmax.xlane.f32.xlu1 %v587_v43 }
 0x142   :  { %v2519_v44 = vpop.f32.mrf.mxu3 }
 0x143   :  { %v590_v45 = vsel %vm583_vm2, %v2519_v44, -inf }
 0x144   :  { %591 = vmax.xlane.f32.xlu2 %v590_v45 }
 0x14a   :  { %v2523_v46 = vpop.f32.mrf.mxu3 }
 0x14b   :  { %v593_v47 = vsel %vm583_vm2, %v2523_v46, -inf }
 0x14c   :  { %594 = vmax.xlane.f32.xlu1 %v593_v47 }
 0x152   :  { %v2527_v48 = vpop.f32.mrf.mxu3 }
 0x153   :  { %v596_v49 = vsel %vm583_vm2, %v2527_v48, -inf }
 0x154   :  { %597 = vmax.xlane.f32.xlu0 %v596_v49 }
 0x15a   :  { %v2531_v50 = vpop.f32.mrf.mxu3 }
 0x15b   :  { %v599_v51 = vsel %vm583_vm2, %v2531_v50, -inf }
 0x15c   :  { %600 = vmax.xlane.f32.xlu2 %v599_v51 }
 0x162   :  { %v2535_v56 = vpop.f32.mrf.mxu3 }
 0x163   :  { %v602_v58 = vsel %vm583_vm2, %v2535_v56, -inf }
 0x164   :  { %603 = vmax.xlane.f32.xlu1 %v602_v58 }
 0x168   :  { %1016 = vrot.lane.b32.xlu0 %v218_v29, %s2361_s6 }
 0x16a   :  { %v2545_v62 = vpop.f32.mrf.mxu3 }
 0x16b   :  { %v605_v63 = vsel %vm583_vm2, %v2545_v62, -inf }
 0x17d   :  { %1102 = vrot.lane.b32.xlu1 %v296_v35, %s2361_s6 }
 0x192   :  { %606 = vmax.xlane.f32.xlu0 %v605_v63 }
 0x1a1   :  { %v586_v6 = vpop.xlane.xlu0 %585 }
 0x1a2   :  { %v608_v7 = vsub.f32 %v398_v40, %v586_v6 }
 0x1a4   :  { %v616_v8 = vmul.f32 1.442695, %v608_v7 }
 0x1a6   :  { %2060 = vpow2.f32 %v616_v8 }
 0x1ac   :  { %v2564_v12 = vpop.eup %2060 }
 0x1ad   :  { %v632_v13 = vsel %vm583_vm2, %v2564_v12, 0.0 }
 0x1ae   :  { %633 = vadd.xlane.f32.xlu2 %v632_v13 }
 0x1af   :  { %v589_v15 = vpop.xlane.xlu1 %588 }
 0x1b0   :  { %v609_v16 = vsub.f32 %v424_v42, %v589_v15 }
 0x1b2   :  { %v618_v17 = vmul.f32 1.442695, %v609_v16 }
 0x1b4   :  { %2062 = vpow2.f32 %v618_v17 }
 0x1b7   :  { %v592_v18 = vpop.xlane.xlu2 %591 }
 0x1b8   :  { %v610_v19 = vsub.f32 %v2519_v44, %v592_v18 }
 0x1ba   :  { %v2571_v20 = vpop.eup %2062  ;;  %v620_v21 = vmul.f32 1.442695, %v610_v19 }
 0x1bb   :  { %v635_v22 = vsel %vm583_vm2, %v2571_v20, 0.0 }
 0x1bc   :  { %2064 = vpow2.f32 %v620_v21  ;;  %636 = vadd.xlane.f32.xlu1 %v635_v22 }
 0x1bf   :  { %v595_v41 = vpop.xlane.xlu1 %594 }
 0x1c0   :  { %v611_v43 = vsub.f32 %v2523_v46, %v595_v41 }
 0x1c2   :  { %v2575_v23 = vpop.eup %2064  ;;  %v622_v44 = vmul.f32 1.442695, %v611_v43 }
 0x1c3   :  { %v638_v25 = vsel %vm583_vm2, %v2575_v23, 0.0 }
 0x1c4   :  { %639 = vadd.xlane.f32.xlu0 %v638_v25 }
 0x1c6   :  { %1100 = vrot.lane.b32.xlu2 %v2473_v24, %s2361_s6 }
 0x1c7   :  { %v598_v26 = vpop.xlane.xlu0 %597 }
 0x1c8   :  { %v612_v27 = vsub.f32 %v2527_v48, %v598_v26  ;;  %v2599_v48 = vpop.f32.mrf.mxu2 }
 0x1c9   :  { %794 = vmatpush.msrb.mxu3 %v2599_v48 }
 0x1ca   :  { %v624_v28 = vmul.f32 1.442695, %v612_v27 }
 0x1cc   :  { %2066 = vpow2.f32 %v624_v28 }
 0x1cf   :  { %v601_v29 = vpop.xlane.xlu2 %600 }
 0x1d0   :  { %v613_v31 = vsub.f32 %v2531_v50, %v601_v29  ;;  %v2604_v49 = vpop.f32.mrf.mxu2 }
 0x1d1   :  { %v2043_v46 = vpack.i.bf16 %v2604_v49, %v2599_v48  ;;  %817 = vmatpush.msrb.mxu0 %v2604_v49 }
 0x1d2   :  { %v2584_v32 = vpop.eup %2066  ;;  %v626_v35 = vmul.f32 1.442695, %v613_v31 }
 0x1d3   :  { %v644_v40 = vsel %vm583_vm2, %v2584_v32, 0.0 }
 0x1d4   :  { %2068 = vpow2.f32 %v626_v35  ;;  %645 = vadd.xlane.f32.xlu0 %v644_v40 }
 0x1d5   :  { %2070 = vpow2.f32 %v622_v44 }
 0x1d8   :  { %v2614_v52 = vpop.f32.mrf.mxu2 }
 0x1d9   :  { %840 = vmatpush.msrb.mxu1 %v2614_v52 }
 0x1da   :  { %v2588_v24 = vpop.eup %2068  ;;  %v2609_v50 = vpop.permute.xlu0 %1016 }
 0x1db   :  { %v647_v42 = vsel %vm583_vm2, %v2588_v24, 0.0  ;;  %v2595_v45 = vpop.eup %2070 }
 0x1dc   :  { %648 = vadd.xlane.f32.xlu1 %v647_v42  ;;  %v641_v47 = vsel %vm583_vm2, %v2595_v45, 0.0 }
 0x1e0   :  { %v2618_v57 = vpop.f32.mrf.mxu2 }
 0x1e1   :  { %863 = vmatpush.msra.mxu2 %v2618_v57 }
 0x1e8   :  { %1156 = vrot.lane.b32.xlu0 %v2513_v39, %s2361_s6  ;;  %v604_v39 = vpop.xlane.xlu1 %603  ;;  %v2629_v60 = vpop.f32.mrf.mxu2 }
 0x1e9   :  { %v614_v51 = vsub.f32 %v2535_v56, %v604_v39  ;;  %886 = vmatpush.msra.mxu3 %v2629_v60 }
 0x1eb   :  { %v628_v53 = vmul.f32 1.442695, %v614_v51 }
 0x1ed   :  { %2072 = vpow2.f32 %v628_v53 }
 0x1ef   :  { %642 = vadd.xlane.f32.xlu2 %v641_v47 }
 0x1f0   :  { %v2637_v63 = vpop.permute.xlu1 %1102 }
 0x1f3   :  { %v2621_v58 = vpop.eup %2072 }
 0x1f4   :  { %v650_v56 = vsel %vm583_vm2, %v2621_v58, 0.0 }
 0x1f5   :  { %1158 = vrot.lane.b32.xlu1 %v2509_v38, %s2361_s6 }
 0x1fd   :  { %1074 = vrot.lane.b32.xlu1 %v2490_v33, %s2361_s6 }
 0x205   :  { %v607_v38 = vpop.xlane.xlu0 %606 }
 0x206   :  { %v615_v54 = vsub.f32 %v2545_v62, %v607_v38  ;;  %v2632_v62 = vpop.f32.mrf.mxu2 }
 0x207   :  { %909 = vmatpush.msra.mxu0 %v2632_v62  ;;  %v2048_v4 = vpack.i.bf16 %v2632_v62, %v2614_v52 }
 0x208   :  { %v630_v55 = vmul.f32 1.442695, %v615_v54 }
 0x20a   :  { %2074 = vpow2.f32 %v630_v55 }
 0x20e   :  { %v2643_v7 = vpop.f32.mrf.mxu2 }
 0x20f   :  { %932 = vmatpush.msra.mxu1 %v2643_v7 }
 0x210   :  { %v2623_v33 = vpop.eup %2074 }
 0x211   :  { %v653_v59 = vsel %vm583_vm2, %v2623_v33, 0.0 }
 0x212   :  { %651 = vadd.xlane.f32.xlu0 %v650_v56  ;;  %654 = vadd.xlane.f32.xlu2 %v653_v59 }
 0x221   :  { %v634_v61 = vpop.xlane.xlu2 %633 }
 0x222   :  { %2076 = vrcp.f32 %v634_v61  ;;  %v667_v9 = vand.u32 2147483648, %v634_v61  ;;  %v665_v15 = vand.u32 2147483647, %v634_v61  ;;  %vm661_vm4 = vweird.f32 %v634_v61 }
 0x224   :  { %v668_v17 = vor.u32 1.1754944e-38, %v667_v9  ;;  %vm666_vm6 = vcmp.eq.f32.partialorder %v665_v15, 8.507059e+37 }
 0x226   :  { %1128 = vrot.lane.b32.xlu0 %v2505_v37, %s2361_s6 }
 0x228   :  { %v2077_v0 = vpop.eup %2076 }
 0x229   :  { %v657_v6 = vmul.f32 %v2077_v0, %v634_v61  ;;  %vm662_vm3 = vweird.f32 %v2077_v0 }
 0x22a   :  { %1130 = vrot.lane.b32.xlu2 %v2501_v36, %s2361_s6  ;;  %vm663_vm5 = vmor %vm661_vm4, %vm662_vm3 }
 0x22b   :  { %v658_v8 = vsub.f32 1.0, %v657_v6  ;;  %v2660_v6 = vpop.f32.mrf.mxu2 }
 0x22c   :  { %955 = vmatpush.msrb.mxu2 %v2660_v6 }
 0x22d   :  { %v659_v13 = vmul.f32 %v2077_v0, %v658_v8 }
 0x22f   :  { %v660_v37 = vadd.f32 %v2077_v0, %v659_v13  ;;  %v637_v16 = vpop.xlane.xlu1 %636 }
 0x230   :  { %2078 = vrcp.f32 %v637_v16  ;;  %v681_v27 = vand.u32 2147483648, %v637_v16  ;;  %v679_v29 = vand.u32 2147483647, %v637_v16  ;;  %vm675_vm8 = vweird.f32 %v637_v16 }
 0x231   :  { %v664_v18 = vsel %vm663_vm5, %v2077_v0, %v660_v37 }
 0x232   :  { %v669_v19 = vsel %vm666_vm6, %v668_v17, %v664_v18  ;;  %1072 = vrot.lane.b32.xlu2 %v2494_v34, %s2361_s6  ;;  %v682_v34 = vor.u32 1.1754944e-38, %v681_v27  ;;  %vm680_vm10 = vcmp.eq.f32.partialorder %v679_v29, 8.507059e+37  ;;  %v1101_v17 = vpop.permute.xlu2 %1100 }
 0x233   :  { %v768_v36 = vmul.f32 %v2564_v12, %v669_v19 }
 0x235   :  { %1978 = vmatmul.msk.f32.vlgmr.msrb.gmra.mxu3 %vm583_vm2, %v768_v36 }
 0x236   :  { %v2079_v21 = vpop.eup %2078  ;;  %1986 = vmatpush.xpose.msk.msrb.mxu3 %vm374_vm1, %v2557_v5 }
 0x237   :  { %v671_v22 = vmul.f32 %v2079_v21, %v637_v16  ;;  %v640_v25 = vpop.xlane.xlu0 %639  ;;  %vm676_vm7 = vweird.f32 %v2079_v21 }
 0x238   :  { %2080 = vrcp.f32 %v640_v25  ;;  %vm677_vm9 = vmor %vm675_vm8, %vm676_vm7  ;;  %v695_v42 = vand.u32 2147483648, %v640_v25  ;;  %v693_v44 = vand.u32 2147483647, %v640_v25  ;;  %vm689_vm12 = vweird.f32 %v640_v25 }
 0x239   :  { %v672_v26 = vsub.f32 1.0, %v671_v22 }
 0x23a   :  { %v696_v39 = vor.u32 1.1754944e-38, %v695_v42  ;;  %vm694_vm14 = vcmp.eq.f32.partialorder %v693_v44, 8.507059e+37 }
 0x23b   :  { %v673_v28 = vmul.f32 %v2079_v21, %v672_v26 }
 0x23d   :  { %v674_v30 = vadd.f32 %v2079_v21, %v673_v28 }
 0x23e   :  { %v2081_v31 = vpop.eup %2080 }
 0x23f   :  { %v685_v12 = vmul.f32 %v2081_v31, %v640_v25  ;;  %v678_v35 = vsel %vm677_vm9, %v2079_v21, %v674_v30  ;;  %vm690_vm11 = vweird.f32 %v2081_v31 }
 0x240   :  { %v683_v40 = vsel %vm680_vm10, %v682_v34, %v678_v35  ;;  %vm691_vm13 = vmor %vm689_vm12, %vm690_vm11 }
 0x241   :  { %v686_v41 = vsub.f32 1.0, %v685_v12  ;;  %v769_v5 = vmul.f32 %v2571_v20, %v683_v40 }
 0x243   :  { %v687_v43 = vmul.f32 %v2081_v31, %v686_v41  ;;  %1979 = vmatmul.msk.f32.vlgmr.msrb.gmra.mxu0 %vm583_vm2, %v769_v5 }
 0x244   :  { %1988 = vmatpush.xpose.msk.msrb.mxu0 %vm374_vm1, %v2550_v1 }
 0x245   :  { %v688_v47 = vadd.f32 %v2081_v31, %v687_v43 }
 0x247   :  { %v692_v51 = vsel %vm691_vm13, %v2081_v31, %v688_v47  ;;  %v646_v53 = vpop.xlane.xlu0 %645 }
 0x248   :  { %v697_v38 = vsel %vm694_vm14, %v696_v39, %v692_v51  ;;  %2082 = vrcp.f32 %v646_v53  ;;  %v723_v59 = vand.u32 2147483648, %v646_v53  ;;  %v721_v0 = vand.u32 2147483647, %v646_v53 }
 0x249   :  { %v770_v20 = vmul.f32 %v2575_v23, %v697_v38  ;;  %vm717_vm3 = vweird.f32 %v646_v53 }
 0x24a   :  { %v724_v9 = vor.u32 1.1754944e-38, %v723_v59  ;;  %vm722_vm5 = vcmp.eq.f32.partialorder %v721_v0, 8.507059e+37 }
 0x24b   :  { %1980 = vmatmul.msk.f32.vlgmr.msrb.gmra.mxu1 %vm583_vm2, %v770_v20 }
 0x24c   :  { %1990 = vmatpush.xpose.msk.msrb.mxu1 %vm374_vm1, %v2568_v14 }
 0x24e   :  { %v2083_v54 = vpop.eup %2082 }
 0x24f   :  { %v713_v55 = vmul.f32 %v2083_v54, %v646_v53  ;;  %v649_v56 = vpop.xlane.xlu1 %648  ;;  %vm718_vm15 = vweird.f32 %v2083_v54 }
 0x250   :  { %2084 = vrcp.f32 %v649_v56  ;;  %vm719_vm4 = vmor %vm717_vm3, %vm718_vm15  ;;  %v737_v18 = vand.u32 2147483648, %v649_v56  ;;  %v735_v36 = vand.u32 2147483647, %v649_v56  ;;  %vm731_vm7 = vweird.f32 %v649_v56 }
 0x251   :  { %v714_v1 = vsub.f32 1.0, %v713_v55 }
 0x252   :  { %v738_v22 = vor.u32 1.1754944e-38, %v737_v18  ;;  %vm736_vm9 = vcmp.eq.f32.partialorder %v735_v36, 8.507059e+37 }
 0x253   :  { %v715_v61 = vmul.f32 %v2083_v54, %v714_v1 }
 0x255   :  { %v716_v8 = vadd.f32 %v2083_v54, %v715_v61 }
 0x256   :  { %v2085_v23 = vpop.eup %2084 }
 0x257   :  { %v720_v13 = vsel %vm719_vm4, %v2083_v54, %v716_v8  ;;  %v727_v14 = vmul.f32 %v2085_v23, %v649_v56  ;;  %vm732_vm6 = vweird.f32 %v2085_v23 }
 0x258   :  { %v725_v15 = vsel %vm722_vm5, %v724_v9, %v720_v13  ;;  %vm733_vm8 = vmor %vm731_vm7, %vm732_vm6 }
 0x259   :  { %v728_v37 = vsub.f32 1.0, %v727_v14  ;;  %v772_v16 = vmul.f32 %v2584_v32, %v725_v15 }
 0x25b   :  { %v729_v19 = vmul.f32 %v2085_v23, %v728_v37  ;;  %1982 = vmatmul.msk.f32.vlgmr.msra.gmra.mxu3 %vm583_vm2, %v772_v16 }
 0x25d   :  { %v730_v21 = vadd.f32 %v2085_v23, %v729_v19 }
 0x25f   :  { %v734_v25 = vsel %vm733_vm8, %v2085_v23, %v730_v21 }
 0x260   :  { %v739_v26 = vsel %vm736_vm9, %v738_v22, %v734_v25 }
 0x261   :  { %v773_v27 = vmul.f32 %v2588_v24, %v739_v26 }
 0x262   :  { %v643_v28 = vpop.xlane.xlu2 %642 }
 0x263   :  { %2086 = vrcp.f32 %v643_v28  ;;  %1983 = vmatmul.msk.f32.vlgmr.msra.gmra.mxu0 %vm583_vm2, %v773_v27  ;;  %1987 = vmatmul.msk.f32.vlgmr.msrb.gmra.mxu3 %vm374_vm1, %v2554_v3  ;;  %v709_v34 = vand.u32 2147483648, %v643_v28  ;;  %v707_v24 = vand.u32 2147483647, %v643_v28  ;;  %vm703_vm11 = vweird.f32 %v643_v28 }
 0x264   :  { %1996 = vmatpush.xpose.msk.msra.mxu0 %vm374_vm1, %v2637_v63 }
 0x265   :  { %v710_v3 = vor.u32 1.1754944e-38, %v709_v34  ;;  %vm708_vm13 = vcmp.eq.f32.partialorder %v707_v24, 8.507059e+37 }
 0x267   :  { %v1159_v32 = vpop.permute.xlu1 %1158 }
 0x269   :  { %v2087_v29 = vpop.eup %2086 }
 0x26a   :  { %v699_v30 = vmul.f32 %v2087_v29, %v643_v28  ;;  %vm704_vm10 = vweird.f32 %v2087_v29 }
 0x26b   :  { %1989 = vmatmul.msk.f32.vlgmr.msrb.gmra.mxu0 %vm374_vm1, %v2559_v10  ;;  %vm705_vm12 = vmor %vm703_vm11, %vm704_vm10  ;;  %v1157_v10 = vpop.permute.xlu0 %1156 }
 0x26c   :  { %v700_v31 = vsub.f32 1.0, %v699_v30 }
 0x26e   :  { %v701_v12 = vmul.f32 %v2087_v29, %v700_v31 }
 0x26f   :  { %v1075_v35 = vpop.permute.xlu1 %1074 }
 0x270   :  { %v702_v40 = vadd.f32 %v2087_v29, %v701_v12  ;;  %1994 = vmatpush.xpose.msk.msra.mxu3 %vm374_vm1, %v1075_v35 }
 0x272   :  { %v706_v41 = vsel %vm705_vm12, %v2087_v29, %v702_v40 }
 0x273   :  { %v711_v63 = vsel %vm708_vm13, %v710_v3, %v706_v41  ;;  %1997 = vmatmul.msk.f32.vlgmr.msra.gmra.mxu0 %vm374_vm1, %v1101_v17 }
 0x274   :  { %v771_v5 = vmul.f32 %v2595_v45, %v711_v63 }
 0x276   :  { %1981 = vmatmul.msk.f32.vlgmr.msra.gmra.mxu2 %vm583_vm2, %v771_v5 }
 0x277   :  { %1992 = vmatpush.xpose.msk.msra.mxu2 %vm374_vm1, %v2562_v11 }
 0x285   :  { %v655_v42 = vpop.xlane.xlu2 %654  ;;  %v652_v43 = vpop.xlane.xlu0 %651 }
 0x286   :  { %2088 = vrcp.f32 %v655_v42  ;;  %v765_v20 = vand.u32 2147483648, %v655_v42  ;;  %v763_v45 = vand.u32 2147483647, %v655_v42  ;;  %v751_v56 = vand.u32 2147483648, %v652_v43 }
 0x287   :  { %2090 = vrcp.f32 %v652_v43  ;;  %v749_v11 = vand.u32 2147483647, %v652_v43  ;;  %vm759_vm3 = vweird.f32 %v655_v42  ;;  %vm745_vm5 = vweird.f32 %v652_v43 }
 0x288   :  { %v766_v61 = vor.u32 1.1754944e-38, %v765_v20  ;;  %vm764_vm6 = vcmp.eq.f32.partialorder %v763_v45, 8.507059e+37  ;;  %v752_v23 = vor.u32 1.1754944e-38, %v751_v56 }
 0x289   :  { %vm750_vm8 = vcmp.eq.f32.partialorder %v749_v11, 8.507059e+37 }
 0x28c   :  { %v2089_v44 = vpop.eup %2088 }
 0x28d   :  { %v2091_v47 = vpop.eup %2090  ;;  %v755_v39 = vmul.f32 %v2089_v44, %v655_v42  ;;  %v1131_v51 = vpop.permute.xlu2 %1130  ;;  %vm760_vm14 = vweird.f32 %v2089_v44 }
 0x28e   :  { %v741_v53 = vmul.f32 %v2091_v47, %v652_v43  ;;  %vm746_vm15 = vweird.f32 %v2091_v47  ;;  %vm761_vm4 = vmor %vm759_vm3, %vm760_vm14 }
 0x28f   :  { %v756_v38 = vsub.f32 1.0, %v755_v39  ;;  %vm747_vm7 = vmor %vm745_vm5, %vm746_vm15 }
 0x290   :  { %v742_v54 = vsub.f32 1.0, %v741_v53 }
 0x291   :  { %v757_v55 = vmul.f32 %v2089_v44, %v756_v38 }
 0x292   :  { %v743_v1 = vmul.f32 %v2091_v47, %v742_v54 }
 0x293   :  { %v758_v59 = vadd.f32 %v2089_v44, %v757_v55 }
 0x294   :  { %v744_v0 = vadd.f32 %v2091_v47, %v743_v1 }
 0x295   :  { %v762_v8 = vsel %vm761_vm4, %v2089_v44, %v758_v59  ;;  %v1073_v9 = vpop.permute.xlu2 %1072 }
 0x296   :  { %v767_v13 = vsel %vm764_vm6, %v766_v61, %v762_v8  ;;  %v748_v14 = vsel %vm747_vm7, %v2091_v47, %v744_v0  ;;  %1995 = vmatmul.msk.f32.vlgmr.msra.gmra.mxu3 %vm374_vm1, %v1073_v9 }
 0x297   :  { %v753_v15 = vsel %vm750_vm8, %v752_v23, %v748_v14  ;;  %v775_v37 = vmul.f32 %v2623_v33, %v767_v13 }
 0x298   :  { %v774_v16 = vmul.f32 %v2621_v58, %v753_v15  ;;  %v1129_v17 = vpop.permute.xlu0 %1128 }
 0x299   :  { %1985 = vmatmul.msk.f32.vlgmr.msrb.gmra.mxu2 %vm583_vm2, %v775_v37 }
 0x29a   :  { %1984 = vmatmul.msk.f32.vlgmr.msra.gmra.mxu1 %vm583_vm2, %v774_v16  ;;  %2000 = vmatpush.xpose.msk.msrb.mxu2 %vm374_vm1, %v1159_v32 }
 0x29b   :  { %1998 = vmatpush.xpose.msk.msra.mxu1 %vm374_vm1, %v1131_v51 }
 0x2a1   :  { %1993 = vmatmul.msk.f32.vlgmr.msra.gmra.mxu2 %vm374_vm1, %v2552_v2 }
 0x2a2   :  { %1991 = vmatmul.msk.f32.vlgmr.msrb.gmra.mxu1 %vm374_vm1, %v2609_v50 }
 0x2a9   :  { %2001 = vmatmul.msk.f32.vlgmr.msrb.gmra.mxu2 %vm374_vm1, %v1157_v10 }
 0x2aa   :  { %1999 = vmatmul.msk.f32.vlgmr.msra.gmra.mxu1 %vm374_vm1, %v1129_v17 }
 0x2b8   :  { %v2692_v58 = vpop.f32.mrf.mxu3 }
 0x2c0   :  { %v2694_v33 = vpop.f32.mrf.mxu0 }
 0x2c8   :  { %v2703_v26 = vpop.f32.mrf.mxu1 }
 0x2de   :  { %v2696_v18 = vpop.f32.mrf.mxu3 }
 0x2e0   :  { %v2698_v19 = vpop.f32.mrf.mxu0 }
 0x2e6   :  { %v985_v36 = vpop.f32.mrf.mxu3 }
 0x2e7   :  { %v1184_v21 = vsel %vm583_vm2, %v985_v36, -inf }
 0x2e8   :  { %v1013_v2 = vpop.f32.mrf.mxu0  ;;  %1185 = vmax.xlane.f32.xlu1 %v1184_v21 }
 0x2e9   :  { %v1187_v50 = vsel %vm583_vm2, %v1013_v2, -inf }
 0x2ea   :  { %1188 = vmax.xlane.f32.xlu0 %v1187_v50 }
 0x2f0   :  { %v1125_v22 = vpop.f32.mrf.mxu0 }
 0x2f1   :  { %v1199_v25 = vsel %vm583_vm2, %v1125_v22, -inf }
 0x2f2   :  { %1200 = vmax.xlane.f32.xlu1 %v1199_v25 }
 0x2f9   :  { %v2705_v27 = vpop.f32.mrf.mxu2 }
 0x317   :  { %v2707_v28 = vpop.f32.mrf.mxu1 }
 0x319   :  { %v1097_v32 = vpop.f32.mrf.mxu3 }
 0x31a   :  { %v1196_v29 = vsel %vm583_vm2, %v1097_v32, -inf }
 0x31b   :  { %1197 = vmax.xlane.f32.xlu0 %v1196_v29 }
 0x31c   :  { %v2710_v30 = vpop.f32.mrf.mxu2 }
 0x31f   :  { %v1041_v31 = vpop.f32.mrf.mxu1 }
 0x320   :  { %v1190_v34 = vsel %vm583_vm2, %v1041_v31, -inf }
 0x321   :  { %1191 = vmax.xlane.f32.xlu2 %v1190_v34 }
 0x324   :  { %v1069_v12 = vpop.f32.mrf.mxu2 }
 0x325   :  { %v1193_v24 = vsel %vm583_vm2, %v1069_v12, -inf }
 0x326   :  { %1194 = vmax.xlane.f32.xlu0 %v1193_v24 }
 0x327   :  { %v1153_v35 = vpop.f32.mrf.mxu1 }
 0x328   :  { %v1202_v40 = vsel %vm583_vm2, %v1153_v35, -inf }
 0x329   :  { %1203 = vmax.xlane.f32.xlu2 %v1202_v40 }
 0x32c   :  { %v1181_v3 = vpop.f32.mrf.mxu2 }
 0x32d   :  { %v1205_v41 = vsel %vm583_vm2, %v1181_v3, -inf }
 0x32e   :  { %1206 = vmax.xlane.f32.xlu1 %v1205_v41 }
 0x33a   :  { %2044 = vrot.lane.b32.xlu0 %v2043_v46, %s2361_s6 }
 0x35b   :  { %v1186_v63 = vpop.xlane.xlu1 %1185 }
 0x35c   :  { %v1208_v5 = vsub.f32 %v985_v36, %v1186_v63 }
 0x35d   :  { %v1189_v10 = vpop.xlane.xlu0 %1188 }
 0x35e   :  { %v1216_v42 = vmul.f32 1.442695, %v1208_v5  ;;  %v1209_v43 = vsub.f32 %v1013_v2, %v1189_v10 }
 0x360   :  { %2092 = vpow2.f32 %v1216_v42  ;;  %v1218_v44 = vmul.f32 1.442695, %v1209_v43 }
 0x362   :  { %2094 = vpow2.f32 %v1218_v44 }
 0x365   :  { %v1201_v49 = vpop.xlane.xlu1 %1200 }
 0x366   :  { %v2720_v47 = vpop.eup %2092  ;;  %v1213_v38 = vsub.f32 %v1125_v22, %v1201_v49 }
 0x367   :  { %v1232_v39 = vsel %vm583_vm2, %v2720_v47, 0.0 }
 0x368   :  { %v2724_v51 = vpop.eup %2094  ;;  %1233 = vadd.xlane.f32.xlu2 %v1232_v39  ;;  %v1226_v54 = vmul.f32 1.442695, %v1213_v38 }
 0x369   :  { %v1235_v48 = vsel %vm583_vm2, %v2724_v51, 0.0 }
 0x36a   :  { %1236 = vadd.xlane.f32.xlu1 %v1235_v48 }
 0x38e   :  { %v1198_v46 = vpop.xlane.xlu0 %1197 }
 0x38f   :  { %v1212_v53 = vsub.f32 %v1097_v32, %v1198_v46 }
 0x391   :  { %v1224_v20 = vmul.f32 1.442695, %v1212_v53 }
 0x393   :  { %2096 = vpow2.f32 %v1224_v20 }
 0x394   :  { %v1192_v55 = vpop.xlane.xlu2 %1191  ;;  %2098 = vpow2.f32 %v1226_v54 }
 0x395   :  { %v1210_v45 = vsub.f32 %v1041_v31, %v1192_v55 }
 0x397   :  { %v1220_v56 = vmul.f32 1.442695, %v1210_v45 }
 0x399   :  { %v2728_v1 = vpop.eup %2096  ;;  %2100 = vpow2.f32 %v1220_v56  ;;  %v1195_v11 = vpop.xlane.xlu0 %1194 }
 0x39a   :  { %v1211_v59 = vsub.f32 %v1069_v12, %v1195_v11  ;;  %v1244_v61 = vsel %vm583_vm2, %v2728_v1, 0.0  ;;  %v2732_v9 = vpop.eup %2098  ;;  %v2053_v12 = vpack.i.bf16 %v2660_v6, %v2643_v7 }
 0x39b   :  { %1245 = vadd.xlane.f32.xlu2 %v1244_v61  ;;  %v1247_v17 = vsel %vm583_vm2, %v2732_v9, 0.0 }
 0x39c   :  { %v1222_v0 = vmul.f32 1.442695, %v1211_v59  ;;  %v1204_v8 = vpop.xlane.xlu2 %1203 }
 0x39d   :  { %v1214_v23 = vsub.f32 %v1153_v35, %v1204_v8 }
 0x39e   :  { %2102 = vpow2.f32 %v1222_v0 }
 0x39f   :  { %v2734_v13 = vpop.eup %2100  ;;  %v1228_v14 = vmul.f32 1.442695, %v1214_v23 }
 0x3a0   :  { %v1238_v15 = vsel %vm583_vm2, %v2734_v13, 0.0 }
 0x3a1   :  { %2104 = vpow2.f32 %v1228_v14  ;;  %1239 = vadd.xlane.f32.xlu0 %v1238_v15  ;;  %v1207_v37 = vpop.xlane.xlu1 %1206 }
 0x3a2   :  { %v1215_v16 = vsub.f32 %v1181_v3, %v1207_v37 }
 0x3a3   :  { %1248 = vadd.xlane.f32.xlu2 %v1247_v17 }
 0x3a4   :  { %v2740_v36 = vpop.eup %2102  ;;  %v1230_v21 = vmul.f32 1.442695, %v1215_v16 }
 0x3a5   :  { %v1241_v2 = vsel %vm583_vm2, %v2740_v36, 0.0 }
 0x3a6   :  { %2106 = vpow2.f32 %v1230_v21  ;;  %1242 = vadd.xlane.f32.xlu1 %v1241_v2 }
 0x3a7   :  { %v2744_v50 = vpop.eup %2104 }
 0x3a8   :  { %v1250_v22 = vsel %vm583_vm2, %v2744_v50, 0.0 }
 0x3ab   :  { %1251 = vadd.xlane.f32.xlu2 %v1250_v22 }
 0x3ac   :  { %v2748_v25 = vpop.eup %2106  ;;  %v2045_v32 = vpop.permute.xlu0 %2044 }
 0x3ad   :  { %v2047_v29 = vunpack.i.h.bf16 %v2045_v32  ;;  %v2046_v31 = vunpack.i.l.bf16 %v2045_v32  ;;  %v1253_v34 = vsel %vm583_vm2, %v2748_v25, 0.0 }
 0x3ae   :  { %1254 = vadd.xlane.f32.xlu1 %v1253_v34 }
 0x3af   :  { %1398 = vmatpush.msrb.mxu3 %v2046_v31  ;;  %1425 = vmatpush.msrb.mxu0 %v2047_v29 }
 0x3b5   :  { %2054 = vrot.lane.b32.xlu0 %v2053_v12, %s2361_s6 }
 0x3bd   :  { %1485 = vrot.lane.b32.xlu0 %v2629_v60, %s2361_s6 }
 0x3c3   :  { %1458 = vrot.lane.b32.xlu2 %v2618_v57, %s2361_s6 }
 0x3c7   :  { %2049 = vrot.lane.b32.xlu1 %v2048_v4, %s2361_s6 }
 0x3db   :  { %v1234_v24 = vpop.xlane.xlu2 %1233 }
 0x3dc   :  { %2108 = vrcp.f32 %v1234_v24  ;;  %v1267_v63 = vand.u32 2147483648, %v1234_v24  ;;  %v1265_v60 = vand.u32 2147483647, %v1234_v24  ;;  %vm1261_vm10 = vweird.f32 %v1234_v24 }
 0x3dd   :  { %v1237_v35 = vpop.xlane.xlu1 %1236 }
 0x3de   :  { %2110 = vrcp.f32 %v1237_v35  ;;  %v1281_v57 = vand.u32 2147483648, %v1237_v35  ;;  %v1279_v52 = vand.u32 2147483647, %v1237_v35  ;;  %v1268_v62 = vor.u32 1.1754944e-38, %v1267_v63 }
 0x3df   :  { %vm1266_vm13 = vcmp.eq.f32.partialorder %v1265_v60, 8.507059e+37  ;;  %vm1275_vm14 = vweird.f32 %v1237_v35 }
 0x3e0   :  { %v1282_v48 = vor.u32 1.1754944e-38, %v1281_v57  ;;  %vm1280_vm3 = vcmp.eq.f32.partialorder %v1279_v52, 8.507059e+37 }
 0x3e2   :  { %v2109_v40 = vpop.eup %2108 }
 0x3e3   :  { %v1257_v3 = vmul.f32 %v2109_v40, %v1234_v24  ;;  %vm1262_vm9 = vweird.f32 %v2109_v40 }
 0x3e4   :  { %v2111_v7 = vpop.eup %2110  ;;  %vm1263_vm12 = vmor %vm1261_vm10, %vm1262_vm9 }
 0x3e5   :  { %v1258_v6 = vsub.f32 1.0, %v1257_v3  ;;  %v1271_v41 = vmul.f32 %v2111_v7, %v1237_v35  ;;  %vm1276_vm11 = vweird.f32 %v2111_v7 }
 0x3e6   :  { %vm1277_vm15 = vmor %vm1275_vm14, %vm1276_vm11 }
 0x3e7   :  { %v1259_v5 = vmul.f32 %v2109_v40, %v1258_v6  ;;  %v1272_v10 = vsub.f32 1.0, %v1271_v41 }
 0x3e9   :  { %v1260_v42 = vadd.f32 %v2109_v40, %v1259_v5  ;;  %v1273_v43 = vmul.f32 %v2111_v7, %v1272_v10 }
 0x3eb   :  { %v1264_v4 = vsel %vm1263_vm12, %v2109_v40, %v1260_v42  ;;  %v1274_v44 = vadd.f32 %v2111_v7, %v1273_v43 }
 0x3ec   :  { %v1269_v39 = vsel %vm1266_vm13, %v1268_v62, %v1264_v4 }
 0x3ed   :  { %v1278_v49 = vsel %vm1277_vm15, %v2111_v7, %v1274_v44  ;;  %v1368_v46 = vmul.f32 %v2720_v47, %v1269_v39 }
 0x3ee   :  { %v1283_v53 = vsel %vm1280_vm3, %v1282_v48, %v1278_v49 }
 0x3ef   :  { %2002 = vmatmul.msk.f32.vlgmr.msrb.gmra.mxu3 %vm583_vm2, %v1368_v46  ;;  %v1369_v38 = vmul.f32 %v2724_v51, %v1283_v53 }
 0x3f1   :  { %2003 = vmatmul.msk.f32.vlgmr.msrb.gmra.mxu0 %vm583_vm2, %v1369_v38 }
 0x40e   :  { %v1246_v20 = vpop.xlane.xlu2 %1245 }
 0x40f   :  { %2112 = vrcp.f32 %v1246_v20  ;;  %vm1317_vm6 = vweird.f32 %v1246_v20  ;;  %v1323_v32 = vand.u32 2147483648, %v1246_v20  ;;  %v1321_v34 = vand.u32 2147483647, %v1246_v20 }
 0x411   :  { %v1324_v10 = vor.u32 1.1754944e-38, %v1323_v32  ;;  %vm1322_vm11 = vcmp.eq.f32.partialorder %v1321_v34, 8.507059e+37 }
 0x414   :  { %v2767_v55 = vpop.xlane.xlu0 %1239 }
 0x415   :  { %v2113_v54 = vpop.eup %2112  ;;  %2114 = vrcp.f32 %v2767_v55 }
 0x416   :  { %v2769_v45 = vpop.xlane.xlu2 %1248  ;;  %v1313_v56 = vmul.f32 %v2113_v54, %v1246_v20  ;;  %vm1318_vm4 = vweird.f32 %v2113_v54 }
 0x417   :  { %vm2784_vm7 = vmor %vm1317_vm6, %vm1318_vm4 }
 0x418   :  { %v1314_v47 = vsub.f32 1.0, %v1313_v56 }
 0x419   :  { %v1243_v11 = vpop.xlane.xlu1 %1242 }
 0x41a   :  { %2116 = vrcp.f32 %v1243_v11  ;;  %v1315_v8 = vmul.f32 %v2113_v54, %v1314_v47  ;;  %v1309_v17 = vand.u32 2147483648, %v1243_v11  ;;  %v1307_v22 = vand.u32 2147483647, %v1243_v11 }
 0x41b   :  { %2118 = vrcp.f32 %v2769_v45  ;;  %v2775_v51 = vpop.eup %2114  ;;  %vm1303_vm8 = vweird.f32 %v1243_v11  ;;  %v1337_v47 = vand.u32 2147483648, %v2769_v45 }
 0x41c   :  { %v1285_v37 = vmul.f32 %v2775_v51, %v2767_v55  ;;  %v1316_v21 = vadd.f32 %v2113_v54, %v1315_v8  ;;  %v1310_v7 = vor.u32 1.1754944e-38, %v1309_v17  ;;  %vm1308_vm10 = vcmp.eq.f32.partialorder %v1307_v22, 8.507059e+37 }
 0x41d   :  { %vm1290_vm14 = vweird.f32 %v2775_v51  ;;  %v1293_v8 = vand.u32 2147483647, %v2767_v55 }
 0x41e   :  { %v2773_v59 = vpop.xlane.xlu2 %1251  ;;  %v1286_v40 = vsub.f32 1.0, %v1285_v37  ;;  %v1320_v41 = vsel %vm2784_vm7, %v2113_v54, %v1316_v21  ;;  %vm1331_vm7 = vweird.f32 %v2769_v45  ;;  %v1338_v21 = vor.u32 1.1754944e-38, %v1337_v47 }
 0x41f   :  { %v1325_v52 = vsel %vm1322_vm11, %v1324_v10, %v1320_v41  ;;  %v1351_v22 = vand.u32 2147483648, %v2773_v59  ;;  %v1634_v41 = vld [vmem:[#allocation13 + $0x10] sm:$0xff] }
 0x420   :  { %v2117_v61 = vpop.eup %2116  ;;  %v1287_v62 = vmul.f32 %v2775_v51, %v1286_v40  ;;  %v1372_v38 = vmul.f32 %v2728_v1, %v1325_v52  ;;  %v1295_v1 = vand.u32 2147483648, %v2767_v55 }
 0x421   :  { %v2777_v0 = vpop.eup %2118  ;;  %v1299_v23 = vmul.f32 %v2117_v61, %v1243_v11  ;;  %v1255_v14 = vpop.xlane.xlu1 %1254  ;;  %vm1304_vm5 = vweird.f32 %v2117_v61 }
 0x422   :  { %2120 = vrcp.f32 %v1255_v14  ;;  %v1327_v16 = vmul.f32 %v2777_v0, %v2769_v45  ;;  %vm1305_vm9 = vmor %vm1303_vm8, %vm1304_vm5  ;;  %v1365_v44 = vand.u32 2147483648, %v1255_v14  ;;  %v1363_v49 = vand.u32 2147483647, %v1255_v14 }
 0x423   :  { %v1300_v15 = vsub.f32 1.0, %v1299_v23  ;;  %2122 = vrcp.f32 %v2773_v59  ;;  %vm1359_vm13 = vweird.f32 %v1255_v14  ;;  %vm1332_vm15 = vweird.f32 %v2777_v0 }
 0x424   :  { %v1328_v3 = vsub.f32 1.0, %v1327_v16  ;;  %v1366_v20 = vor.u32 1.1754944e-38, %v1365_v44  ;;  %vm1364_vm4 = vcmp.eq.f32.partialorder %v1363_v49, 8.507059e+37  ;;  %vm1289_vm5 = vweird.f32 %v2767_v55  ;;  %vm1333_vm8 = vmor %vm1331_vm7, %vm1332_vm15 }
 0x425   :  { %v1301_v2 = vmul.f32 %v2117_v61, %v1300_v15  ;;  %vm1291_vm6 = vmor %vm1289_vm5, %vm1290_vm14  ;;  %v1335_v23 = vand.u32 2147483647, %v2769_v45  ;;  %v1296_v17 = vor.u32 1.1754944e-38, %v1295_v1  ;;  %v2144_v1 = vld [vmem:[#allocation2 + $0x10] sm:$0xff] }
 0x426   :  { %v1459_v29 = vpop.permute.xlu2 %1458  ;;  %v1329_v4 = vmul.f32 %v2777_v0, %v1328_v3 }
 0x427   :  { %v1302_v12 = vadd.f32 %v2117_v61, %v1301_v2  ;;  %v2788_v24 = vpop.permute.xlu0 %2054  ;;  %1479 = vmatpush.msra.mxu2 %v1459_v29 }
 0x428   :  { %v2121_v35 = vpop.eup %2120  ;;  %v2057_v6 = vunpack.i.h.bf16 %v2788_v24  ;;  %v1330_v54 = vadd.f32 %v2777_v0, %v1329_v4  ;;  %v2056_v34 = vunpack.i.l.bf16 %v2788_v24  ;;  %v1635_v24 = vld [vmem:[#allocation13 + $0x18] sm:$0xff] }
 0x429   :  { %v1306_v63 = vsel %vm1305_vm9, %v2117_v61, %v1302_v12  ;;  %v1355_v5 = vmul.f32 %v2121_v35, %v1255_v14  ;;  %v2793_v60 = vpop.eup %2122  ;;  %vm1360_vm12 = vweird.f32 %v2121_v35  ;;  %vm1294_vm9 = vcmp.eq.f32.partialorder %v1293_v8, 8.507059e+37  ;;  %v2145_v8 = vld [vmem:[#allocation2 + $0x28] sm:$0xff] }
 0x42a   :  { %v1311_v57 = vsel %vm1308_vm10, %v1310_v7, %v1306_v63  ;;  %1587 = vmatpush.msrb.mxu2 %v2057_v6  ;;  %v1341_v39 = vmul.f32 %v2793_v60, %v2773_v59  ;;  %vm1361_vm3 = vmor %vm1359_vm13, %vm1360_vm12  ;;  %v1334_v37 = vsel %vm1333_vm8, %v2777_v0, %v1330_v54  ;;  %vm1336_vm10 = vcmp.eq.f32.partialorder %v1335_v23, 8.507059e+37  ;;  %v1633_v63 = vld [vmem:[#allocation13 + $0x8] sm:$0xff] }
 0x42b   :  { %v1356_v42 = vsub.f32 1.0, %v1355_v5  ;;  %v1371_v43 = vmul.f32 %v2740_v36, %v1311_v57  ;;  %v1288_v36 = vadd.f32 %v2775_v51, %v1287_v62  ;;  %v1339_v2 = vsel %vm1336_vm10, %v1338_v21, %v1334_v37  ;;  %v2143_v54 = vld [vmem:[#allocation2 + $0x8] sm:$0xff] }
 0x42c   :  { %v1342_v56 = vsub.f32 1.0, %v1341_v39  ;;  %vm1346_vm11 = vweird.f32 %v2793_v60  ;;  %vm1345_vm12 = vweird.f32 %v2773_v59  ;;  %v1349_v0 = vand.u32 2147483647, %v2773_v59 }
 0x42d   :  { %v1357_v48 = vmul.f32 %v2121_v35, %v1356_v42  ;;  %2005 = vmatmul.msk.f32.vlgmr.msra.gmra.mxu2 %vm583_vm2, %v1371_v43  ;;  %v1292_v15 = vsel %vm1291_vm6, %v2775_v51, %v1288_v36  ;;  %v1373_v31 = vmul.f32 %v2732_v9, %v1339_v2  ;;  %vm1347_vm13 = vmor %vm1345_vm12, %vm1346_vm11 }
 0x42e   :  { %v1343_v16 = vmul.f32 %v2793_v60, %v1342_v56  ;;  %v1297_v55 = vsel %vm1294_vm9, %v1296_v17, %v1292_v15  ;;  %vm1350_vm14 = vcmp.eq.f32.partialorder %v1349_v0, 8.507059e+37  ;;  %v2146_v15 = vld [vmem:[#allocation2 + $0x18] sm:$0xff]  ;;  %v2363_v0 = vmov 32.0  }
 0x42f   :  { %v1358_v46 = vadd.f32 %v2121_v35, %v1357_v48  ;;  %v1486_v53 = vpop.permute.xlu0 %1485  ;;  %v1370_v29 = vmul.f32 %v2734_v13, %v1297_v55  ;;  %v2147_v55 = vld [vmem:[#allocation2 + $0x30] sm:$0xff]  ;;  %2124 = vrcp.f32 %v2363_v0 }
 0x430   :  { %1506 = vmatpush.msra.mxu3 %v1486_v53  ;;  %v1344_v45 = vadd.f32 %v2793_v60, %v1343_v16 }
 0x431   :  { %v1362_v11 = vsel %vm1361_vm3, %v2121_v35, %v1358_v46  ;;  %2006 = vmatmul.msk.f32.vlgmr.msra.gmra.mxu3 %vm583_vm2, %v1372_v38  ;;  %v1352_v35 = vor.u32 1.1754944e-38, %v1351_v22  ;;  %v2142_v38 = vld [vmem:[#allocation2] sm:$0xff] }
 0x432   :  { %v1367_v61 = vsel %vm1364_vm4, %v1366_v20, %v1362_v11  ;;  %v1348_v12 = vsel %vm1347_vm13, %v2793_v60, %v1344_v45  ;;  %2026 = vmatpush.msrb.mxu3 %v1635_v24  ;;  %v1632_v60 = vld [vmem:[#allocation13] sm:$0xff] }
 0x433   :  { %v1375_v14 = vmul.f32 %v2748_v25, %v1367_v61  ;;  %v1353_v40 = vsel %vm1350_vm14, %v1352_v35, %v1348_v12 }
 0x434   :  { %v1374_v59 = vmul.f32 %v2744_v50, %v1353_v40  ;;  %2027 = vmatpush.msrb.mxu3 %v1634_v41 }
 0x435   :  { %2009 = vmatmul.msk.f32.vlgmr.msrb.gmra.mxu2 %vm583_vm2, %v1375_v14  ;;  %v2125_v12 = vpop.eup %2124 }
 0x436   :  { %2028 = vmatpush.msrb.mxu3 %v1633_v63  ;;  %v1726_v40 = vmul.f32 32.0, %v2125_v12 }
 0x438   :  { %2029 = vmatpush.msrb.mxu3 %v1632_v60 }
 0x439   :  { %v2050_v25 = vpop.permute.xlu1 %2049 }
 0x43a   :  { %v2052_v51 = vunpack.i.h.bf16 %v2050_v25  ;;  %v2051_v32 = vunpack.i.l.bf16 %v2050_v25  ;;  %v2148_v25 = vld [vmem:[#allocation2 + $0x20] sm:$0xff] }
 0x43c   :  { %1452 = vmatpush.msrb.mxu1 %v2051_v32  ;;  %1533 = vmatpush.msra.mxu0 %v2052_v51 }
 0x43d   :  { %2004 = vmatmul.msk.f32.vlgmr.msrb.gmra.mxu1 %vm583_vm2, %v1370_v29  ;;  %2007 = vmatmul.msk.f32.vlgmr.msra.gmra.mxu0 %vm583_vm2, %v1373_v31  ;;  %v2149_v31 = vld [vmem:[#allocation2 + $0x38] sm:$0xff] }
 0x43e   :  { %1560 = vmatpush.msra.mxu1 %v2056_v34  ;;  %1672 = vmatpush.msrb.mxu0 %v1635_v24 }
 0x440   :  { %1673 = vmatpush.msrb.mxu0 %v1634_v41 }
 0x442   :  { %1674 = vmatpush.msrb.mxu0 %v1633_v63 }
 0x444   :  { %1675 = vmatpush.msrb.mxu0 %v1632_v60 }
 0x445   :  { %2008 = vmatmul.msk.f32.vlgmr.msra.gmra.mxu1 %vm583_vm2, %v1374_v59  ;;  %v1727_v59 = vsub.f32 1.0, %v1726_v40 }
 0x46e   :  { %v1427_v9 = vpop.f32.mrf.mxu0 }
 0x46f   :  { %1602 = vrot.lane.b32.xlu1 %v1427_v9, %s2362_s21  ;;  %v1728_v9 = vmul.f32 %v2125_v12, %v1727_v59 }
 0x472   :  { %v1400_v13 = vpop.f32.mrf.mxu3 }
 0x473   :  { %1600 = vrot.lane.b32.xlu0 %v1400_v13, %s2362_s21  ;;  %v1729_v13 = vadd.f32 %v2125_v12, %v1728_v9 }
 0x4b0   :  { %v1481_v3 = vpop.f32.mrf.mxu2 }
 0x4b4   :  { %v1508_v10 = vpop.f32.mrf.mxu3 }
 0x4b8   :  { %v1589_v50 = vpop.f32.mrf.mxu2 }
 0x4ba   :  { %v1454_v7 = vpop.f32.mrf.mxu1  ;;  %v1535_v6 = vpop.f32.mrf.mxu0 }
 0x4bb   :  { %1610 = vrot.lane.b32.xlu2 %v1535_v6, %s2362_s21  ;;  %1604 = vrot.lane.b32.xlu0 %v1454_v7, %s2362_s21 }
 0x4c2   :  { %v1562_v5 = vpop.f32.mrf.mxu1 }
 0x4c3   :  { %1612 = vrot.lane.b32.xlu1 %v1562_v5, %s2362_s21  ;;  %1606 = vrot.lane.b32.xlu2 %v1481_v3, %s2362_s21 }
 0x4c4   :  { %1614 = vrot.lane.b32.xlu0 %v1589_v50, %s2362_s21 }
 0x4cb   :  { %1608 = vrot.lane.b32.xlu1 %v1508_v10, %s2362_s21 }
 0x4e1   :  { %v1603_v43 = vpop.permute.xlu1 %1602 }
 0x4e2   :  { %v1625_v52 = vsel %vm374_vm1, %v2694_v33, %v1603_v43 }
 0x4e5   :  { %v1601_v57 = vpop.permute.xlu0 %1600 }
 0x4e6   :  { %v1624_v42 = vsel %vm374_vm1, %v2692_v58, %v1601_v57 }
 0x4e7   :  { %2010 = vmatmul.msk.f32.vlgmr.msrb.gmra.mxu0 %vm170_vm0, %v1624_v42 }
 0x4ef   :  { %2011 = vmatmul.msk.f32.gmra.mxu0 %vm170_vm0, %v1625_v52 }
 0x515   :  { %v1611_v62 = vpop.permute.xlu2 %1610 }
 0x516   :  { %v1629_v4 = vsel %vm374_vm1, %v2698_v19, %v1611_v62 }
 0x517   :  { %2015 = vmatmul.msk.f32.vlgmr.msrb.gmra.mxu3 %vm170_vm0, %v1629_v4 }
 0x51d   :  { %v1607_v58 = vpop.permute.xlu2 %1606 }
 0x51e   :  { %v1627_v49 = vsel %vm374_vm1, %v2705_v27, %v1607_v58 }
 0x52d   :  { %v1605_v44 = vpop.permute.xlu0 %1604 }
 0x52e   :  { %v1626_v39 = vsel %vm374_vm1, %v2703_v26, %v1605_v44 }
 0x52f   :  { %2012 = vmatmul.msk.f32.gmra.mxu0 %vm170_vm0, %v1626_v39 }
 0x535   :  { %v1613_v48 = vpop.permute.xlu1 %1612 }
 0x536   :  { %v1630_v33 = vsel %vm374_vm1, %v2707_v28, %v1613_v48  ;;  %v1615_v19 = vpop.permute.xlu0 %1614 }
 0x537   :  { %2013 = vmatmul.msk.f32.gmra.mxu0 %vm170_vm0, %v1627_v49  ;;  %2016 = vmatmul.msk.f32.gmra.mxu3 %vm170_vm0, %v1630_v33  ;;  %v1631_v26 = vsel %vm374_vm1, %v2710_v30, %v1615_v19 }
 0x53d   :  { %v1609_v46 = vpop.permute.xlu1 %1608 }
 0x53e   :  { %v1628_v53 = vsel %vm374_vm1, %v2696_v18, %v1609_v46  ;;  %vm1730_vm1 = vweird.f32 %v2125_v12 }
 0x53f   :  { %2014 = vmatmul.msk.f32.gmra.mxu0 %vm170_vm0, %v1628_v53  ;;  %2017 = vmatmul.msk.f32.gmra.mxu3 %vm170_vm0, %v1631_v26  ;;  %v2865_v24 = vsel %vm1730_vm1, %v2125_v12, %v1729_v13  ;;  %v2925_v12 = vld [vmem:[%s2984_s8] ss:$0 sm:$0xff] }
 0x564   :  { %v1677_v27 = vpop.f32.mrf.mxu0 }
 0x565   :  { %v1678_v36 = vadd.f32 %v2142_v38, %v1677_v27 }
 0x567   :  { %v1701_v28 = vsel %vm170_vm0, %v1678_v36, 0.0 }
 0x568   :  { %1702 = vadd.xlane.f32.xlu2 %v1701_v28 }
 0x56c   :  { %v1680_v20 = vpop.f32.mrf.mxu0 }
 0x56d   :  { %v1681_v56 = vadd.f32 %v2143_v54, %v1680_v20 }
 0x56f   :  { %v1704_v11 = vsel %vm170_vm0, %v1681_v56, 0.0 }
 0x570   :  { %1705 = vadd.xlane.f32.xlu0 %v1704_v11 }
 0x59a   :  { %v1692_v61 = vpop.f32.mrf.mxu3 }
 0x59b   :  { %v1693_v23 = vadd.f32 %v2145_v8, %v1692_v61 }
 0x59d   :  { %v1716_v17 = vsel %vm170_vm0, %v1693_v23, 0.0 }
 0x5ac   :  { %v1683_v18 = vpop.f32.mrf.mxu0 }
 0x5ad   :  { %v1684_v47 = vadd.f32 %v2144_v1, %v1683_v18 }
 0x5af   :  { %v1707_v30 = vsel %vm170_vm0, %v1684_v47, 0.0 }
 0x5b0   :  { %1708 = vadd.xlane.f32.xlu1 %v1707_v30 }
 0x5b4   :  { %v1686_v14 = vpop.f32.mrf.mxu0 }
 0x5b5   :  { %v1687_v37 = vadd.f32 %v2146_v15, %v1686_v14 }
 0x5b7   :  { %v1710_v16 = vsel %vm170_vm0, %v1687_v37, 0.0 }
 0x5b8   :  { %1711 = vadd.xlane.f32.xlu2 %v1710_v16  ;;  %1717 = vadd.xlane.f32.xlu1 %v1716_v17 }
 0x5ba   :  { %v1695_v21 = vpop.f32.mrf.mxu3 }
 0x5bb   :  { %v1696_v2 = vadd.f32 %v2147_v55, %v1695_v21 }
 0x5bc   :  { %v1689_v45 = vpop.f32.mrf.mxu0 }
 0x5bd   :  { %v1690_v22 = vadd.f32 %v2148_v25, %v1689_v45  ;;  %v1719_v32 = vsel %vm170_vm0, %v1696_v2, 0.0 }
 0x5bf   :  { %v1713_v51 = vsel %vm170_vm0, %v1690_v22, 0.0 }
 0x5c0   :  { %1714 = vadd.xlane.f32.xlu0 %v1713_v51  ;;  %1720 = vadd.xlane.f32.xlu2 %v1719_v32 }
 0x5c2   :  { %v1698_v29 = vpop.f32.mrf.mxu3 }
 0x5c3   :  { %v1699_v34 = vadd.f32 %v2149_v31, %v1698_v29  ;;  %v2920_v29 = vld [vmem:[%s2983_s7] ss:$0 sm:$0xff]  ;;  %s2364_s7 = smov [#allocation14]  }
 0x5c4   :  { %s1920_s8 = sshll.u32 %s2364_s7, 4  ;;  %s1921_s8 = int_to_ptr.vmem [resolvable:$true] %s1920_s8 }
 0x5c5   :  { %v1722_v35 = vsel %vm170_vm0, %v1699_v34, 0.0 }
 0x5c8   :  { %1723 = vadd.xlane.f32.xlu0 %v1722_v35 }
 0x5db   :  { %v1703_v3 = vpop.xlane.xlu2 %1702 }
 0x5dc   :  { %v1732_v7 = vmul.f32 %v2865_v24, %v1703_v3 }
 0x5de   :  { %v2868_v6 = vsub.f32 %v1678_v36, %v1732_v7 }
 0x5e0   :  { %v1748_v41 = vmul.f32 %v2868_v6, %v2868_v6 }
 0x5e2   :  { %v1756_v63 = vsel %vm170_vm0, %v1748_v41, 0.0 }
 0x5e3   :  { %v1706_v5 = vpop.xlane.xlu0 %1705  ;;  %1757 = vadd.xlane.f32.xlu1 %v1756_v63 }
 0x5e4   :  { %v1733_v50 = vmul.f32 %v2865_v24, %v1706_v5 }
 0x5e6   :  { %v2874_v60 = vsub.f32 %v1681_v56, %v1733_v50 }
 0x5e8   :  { %v1749_v10 = vmul.f32 %v2874_v60, %v2874_v60 }
 0x5ea   :  { %v1759_v57 = vsel %vm170_vm0, %v1749_v10, 0.0 }
 0x5eb   :  { %1760 = vadd.xlane.f32.xlu2 %v1759_v57 }
 0x623   :  { %v1709_v42 = vpop.xlane.xlu1 %1708 }
 0x624   :  { %v1734_v43 = vmul.f32 %v2865_v24, %v1709_v42 }
 0x626   :  { %v2880_v52 = vsub.f32 %v1684_v47, %v1734_v43 }
 0x628   :  { %v1750_v62 = vmul.f32 %v2880_v52, %v2880_v52 }
 0x62a   :  { %v1762_v4 = vsel %vm170_vm0, %v1750_v62, 0.0 }
 0x62b   :  { %v1712_v44 = vpop.xlane.xlu2 %1711  ;;  %1763 = vadd.xlane.f32.xlu0 %v1762_v4  ;;  %v1718_v39 = vpop.xlane.xlu1 %1717 }
 0x62c   :  { %v1735_v58 = vmul.f32 %v2865_v24, %v1712_v44  ;;  %v1737_v48 = vmul.f32 %v2865_v24, %v1718_v39 }
 0x62e   :  { %v2887_v49 = vsub.f32 %v1687_v37, %v1735_v58  ;;  %v2889_v33 = vsub.f32 %v1693_v23, %v1737_v48 }
 0x630   :  { %v1751_v19 = vmul.f32 %v2887_v49, %v2887_v49  ;;  %v1753_v46 = vmul.f32 %v2889_v33, %v2889_v33 }
 0x632   :  { %v1765_v53 = vsel %vm170_vm0, %v1751_v19, 0.0  ;;  %v1771_v26 = vsel %vm170_vm0, %v1753_v46, 0.0 }
 0x633   :  { %v1715_v27 = vpop.xlane.xlu0 %1714  ;;  %v1721_v38 = vpop.xlane.xlu2 %1720  ;;  %1766 = vadd.xlane.f32.xlu1 %v1765_v53  ;;  %1772 = vadd.xlane.f32.xlu0 %v1771_v26 }
 0x634   :  { %v1736_v36 = vmul.f32 %v2865_v24, %v1715_v27  ;;  %v1738_v28 = vmul.f32 %v2865_v24, %v1721_v38 }
 0x636   :  { %v2899_v20 = vsub.f32 %v1690_v22, %v1736_v36  ;;  %v2901_v54 = vsub.f32 %v1696_v2, %v1738_v28 }
 0x638   :  { %v1752_v56 = vmul.f32 %v2899_v20, %v2899_v20  ;;  %v1754_v11 = vmul.f32 %v2901_v54, %v2901_v54 }
 0x63a   :  { %v1768_v18 = vsel %vm170_vm0, %v1752_v56, 0.0  ;;  %v1774_v1 = vsel %vm170_vm0, %v1754_v11, 0.0 }
 0x63b   :  { %v1724_v47 = vpop.xlane.xlu0 %1723  ;;  %1769 = vadd.xlane.f32.xlu2 %v1768_v18  ;;  %1775 = vadd.xlane.f32.xlu1 %v1774_v1 }
 0x63c   :  { %v1739_v30 = vmul.f32 %v2865_v24, %v1724_v47 }
 0x63e   :  { %v2910_v61 = vsub.f32 %v1699_v34, %v1739_v30 }
 0x640   :  { %v1755_v8 = vmul.f32 %v2910_v61, %v2910_v61 }
 0x642   :  { %v1777_v23 = vsel %vm170_vm0, %v1755_v8, 0.0 }
 0x643   :  { %1778 = vadd.xlane.f32.xlu2 %v1777_v23 }
 0x656   :  { %v1758_v14 = vpop.xlane.xlu1 %1757 }
 0x657   :  { %v1780_v15 = vmul.f32 %v1758_v14, %v2865_v24 }
 0x659   :  { %v1788_v37 = vadd.f32 1e-06, %v1780_v15 }
 0x65b   :  { %2126 = vrsqrt.f32 %v1788_v37  ;;  %vm1802_vm15 = vweird.f32 %v1788_v37 }
 0x65e   :  { %v1761_v16 = vpop.xlane.xlu2 %1760 }
 0x65f   :  { %v1781_v17 = vmul.f32 %v1761_v16, %v2865_v24 }
 0x661   :  { %v2127_v21 = vpop.eup %2126  ;;  %v1789_v55 = vadd.f32 1e-06, %v1781_v17 }
 0x662   :  { %v1797_v2 = vmul.f32 %v2127_v21, %v1788_v37  ;;  %vm1803_vm2 = vweird.f32 %v2127_v21 }
 0x663   :  { %2128 = vrsqrt.f32 %v1789_v55  ;;  %vm1804_vm3 = vmor %vm1802_vm15, %vm1803_vm2  ;;  %vm1812_vm5 = vweird.f32 %v1789_v55 }
 0x664   :  { %v1798_v45 = vmul.f32 %v2127_v21, %v1797_v2 }
 0x666   :  { %v1799_v25 = vmul.f32 0.5, %v1798_v45 }
 0x668   :  { %v1800_v22 = vsub.f32 1.5, %v1799_v25 }
 0x669   :  { %v2129_v51 = vpop.eup %2128 }
 0x66a   :  { %v1801_v32 = vmul.f32 %v2127_v21, %v1800_v22  ;;  %v1807_v0 = vmul.f32 %v2129_v51, %v1789_v55  ;;  %vm1813_vm4 = vweird.f32 %v2129_v51 }
 0x66b   :  { %vm1814_vm6 = vmor %vm1812_vm5, %vm1813_vm4 }
 0x66c   :  { %v1805_v31 = vsel %vm1804_vm3, %v2127_v21, %v1801_v32  ;;  %v1808_v34 = vmul.f32 %v2129_v51, %v1807_v0 }
 0x66d   :  { %v1876_v35 = vmul.f32 %v1805_v31, %v2868_v6 }
 0x66e   :  { %v1809_v40 = vmul.f32 0.5, %v1808_v34 }
 0x66f   :  { %v1888_v59 = vmul.f32 %v2920_v29, %v1876_v35 }
 0x670   :  { %v1810_v9 = vsub.f32 1.5, %v1809_v40 }
 0x671   :  { %v1900_v13 = vadd.f32 %v2925_v12, %v1888_v59 }
 0x672   :  { %v1811_v3 = vmul.f32 %v2129_v51, %v1810_v9 }
 0x673   :  { %1908 = vst.msk [vmem:[#allocation14] sm:$0xff] %vm170_vm0, %v1900_v13 }
 0x674   :  { %v1815_v7 = vsel %vm1814_vm6, %v2129_v51, %v1811_v3 }
 0x675   :  { %v1877_v41 = vmul.f32 %v1815_v7, %v2874_v60 }
 0x677   :  { %v1889_v63 = vmul.f32 %v2920_v29, %v1877_v41 }
 0x679   :  { %v1901_v5 = vadd.f32 %v2925_v12, %v1889_v63 }
 0x67b   :  { %1909 = vst.msk [vmem:[#allocation14 + $0x8] sm:$0xff] %vm170_vm0, %v1901_v5 }
 0x69e   :  { %v1764_v6 = vpop.xlane.xlu0 %1763 }
 0x69f   :  { %v1782_v50 = vmul.f32 %v1764_v6, %v2865_v24 }
 0x6a1   :  { %v1790_v10 = vadd.f32 1e-06, %v1782_v50 }
 0x6a3   :  { %2130 = vrsqrt.f32 %v1790_v10  ;;  %vm1822_vm8 = vweird.f32 %v1790_v10 }
 0x6a6   :  { %v1773_v57 = vpop.xlane.xlu0 %1772  ;;  %v1767_v42 = vpop.xlane.xlu1 %1766 }
 0x6a7   :  { %v1785_v43 = vmul.f32 %v1773_v57, %v2865_v24  ;;  %v1783_v62 = vmul.f32 %v1767_v42, %v2865_v24 }
 0x6a9   :  { %v2131_v4 = vpop.eup %2130  ;;  %v1793_v44 = vadd.f32 1e-06, %v1785_v43  ;;  %v1791_v60 = vadd.f32 1e-06, %v1783_v62 }
 0x6aa   :  { %v1817_v39 = vmul.f32 %v2131_v4, %v1790_v10  ;;  %vm1823_vm7 = vweird.f32 %v2131_v4 }
 0x6ab   :  { %2132 = vrsqrt.f32 %v1793_v44  ;;  %vm1824_vm9 = vmor %vm1822_vm8, %vm1823_vm7  ;;  %vm1852_vm12 = vweird.f32 %v1793_v44  ;;  %vm1832_vm14 = vweird.f32 %v1791_v60 }
 0x6ac   :  { %v1818_v58 = vmul.f32 %v2131_v4, %v1817_v39  ;;  %2134 = vrsqrt.f32 %v1791_v60 }
 0x6ae   :  { %v1819_v48 = vmul.f32 0.5, %v1818_v58  ;;  %v1770_v19 = vpop.xlane.xlu2 %1769  ;;  %v1776_v46 = vpop.xlane.xlu1 %1775 }
 0x6af   :  { %v1784_v53 = vmul.f32 %v1770_v19, %v2865_v24  ;;  %v1786_v26 = vmul.f32 %v1776_v46, %v2865_v24 }
 0x6b0   :  { %v1820_v27 = vsub.f32 1.5, %v1819_v48 }
 0x6b1   :  { %v2133_v38 = vpop.eup %2132  ;;  %v1792_v36 = vadd.f32 1e-06, %v1784_v53  ;;  %v2940_v28 = vadd.f32 1e-06, %v1786_v26 }
 0x6b2   :  { %v2135_v56 = vpop.eup %2134  ;;  %v1821_v11 = vmul.f32 %v2131_v4, %v1820_v27  ;;  %v1847_v18 = vmul.f32 %v2133_v38, %v1793_v44  ;;  %vm1853_vm10 = vweird.f32 %v2133_v38 }
 0x6b3   :  { %v1827_v1 = vmul.f32 %v2135_v56, %v1791_v60  ;;  %2136 = vrsqrt.f32 %v1792_v36  ;;  %vm1833_vm11 = vweird.f32 %v2135_v56  ;;  %vm1854_vm13 = vmor %vm1852_vm12, %vm1853_vm10  ;;  %vm1842_vm3 = vweird.f32 %v1792_v36 }
 0x6b4   :  { %v1825_v47 = vsel %vm1824_vm9, %v2131_v4, %v1821_v11  ;;  %v1848_v30 = vmul.f32 %v2133_v38, %v1847_v18  ;;  %2138 = vrsqrt.f32 %v2940_v28  ;;  %vm1834_vm1 = vmor %vm1832_vm14, %vm1833_vm11  ;;  %vm1862_vm5 = vweird.f32 %v2940_v28 }
 0x6b5   :  { %v1878_v8 = vmul.f32 %v1825_v47, %v2880_v52  ;;  %v1828_v23 = vmul.f32 %v2135_v56, %v1827_v1 }
 0x6b6   :  { %v1849_v14 = vmul.f32 0.5, %v1848_v30  ;;  %v1779_v15 = vpop.xlane.xlu2 %1778 }
 0x6b7   :  { %v1890_v37 = vmul.f32 %v2920_v29, %v1878_v8  ;;  %v1829_v16 = vmul.f32 0.5, %v1828_v23  ;;  %v1787_v17 = vmul.f32 %v1779_v15, %v2865_v24 }
 0x6b8   :  { %v1850_v21 = vsub.f32 1.5, %v1849_v14 }
 0x6b9   :  { %v2137_v55 = vpop.eup %2136  ;;  %v1902_v2 = vadd.f32 %v2925_v12, %v1890_v37  ;;  %v1830_v45 = vsub.f32 1.5, %v1829_v16  ;;  %v1795_v25 = vadd.f32 1e-06, %v1787_v17 }
 0x6ba   :  { %v2139_v22 = vpop.eup %2138  ;;  %v1851_v51 = vmul.f32 %v2133_v38, %v1850_v21  ;;  %v1837_v52 = vmul.f32 %v2137_v55, %v1792_v36  ;;  %vm1843_vm2 = vweird.f32 %v2137_v55 }
 0x6bb   :  { %1910 = vst.msk [vmem:[#allocation14 + $0x10] sm:$0xff] %vm170_vm0, %v1902_v2  ;;  %v1831_v32 = vmul.f32 %v2135_v56, %v1830_v45  ;;  %v1857_v0 = vmul.f32 %v2139_v22, %v2940_v28  ;;  %2140 = vrsqrt.f32 %v1795_v25  ;;  %vm1863_vm15 = vweird.f32 %v2139_v22  ;;  %vm1844_vm4 = vmor %vm1842_vm3, %vm1843_vm2 }
 0x6bc   :  { %v1855_v24 = vsel %vm1854_vm13, %v2133_v38, %v1851_v51  ;;  %v1838_v31 = vmul.f32 %v2137_v55, %v1837_v52  ;;  %vm1864_vm6 = vmor %vm1862_vm5, %vm1863_vm15  ;;  %vm1872_vm8 = vweird.f32 %v1795_v25 }
 0x6bd   :  { %v1881_v34 = vmul.f32 %v1855_v24, %v2889_v33  ;;  %v1835_v35 = vsel %vm1834_vm1, %v2135_v56, %v1831_v32  ;;  %v1858_v40 = vmul.f32 %v2139_v22, %v1857_v0 }
 0x6be   :  { %v1879_v59 = vmul.f32 %v1835_v35, %v2887_v49  ;;  %v1839_v9 = vmul.f32 0.5, %v1838_v31 }
 0x6bf   :  { %v1893_v13 = vmul.f32 %v2920_v29, %v1881_v34  ;;  %v1859_v3 = vmul.f32 0.5, %v1858_v40 }
 0x6c0   :  { %v1891_v7 = vmul.f32 %v2920_v29, %v1879_v59  ;;  %v1840_v41 = vsub.f32 1.5, %v1839_v9 }
 0x6c1   :  { %v2141_v63 = vpop.eup %2140  ;;  %v1905_v5 = vadd.f32 %v2925_v12, %v1893_v13  ;;  %v1860_v6 = vsub.f32 1.5, %v1859_v3 }
 0x6c2   :  { %v1903_v50 = vadd.f32 %v2925_v12, %v1891_v7  ;;  %v1841_v33 = vmul.f32 %v2137_v55, %v1840_v41  ;;  %v1867_v10 = vmul.f32 %v2141_v63, %v1795_v25  ;;  %vm1873_vm7 = vweird.f32 %v2141_v63 }
 0x6c3   :  { %1913 = vst.msk [vmem:[#allocation14 + $0x28] sm:$0xff] %vm170_vm0, %v1905_v5  ;;  %v1861_v49 = vmul.f32 %v2139_v22, %v1860_v6  ;;  %vm1874_vm9 = vmor %vm1872_vm8, %vm1873_vm7 }
 0x6c4   :  { %1911 = vst.msk [vmem:[#allocation14 + $0x18] sm:$0xff] %vm170_vm0, %v1903_v50  ;;  %v1845_v57 = vsel %vm1844_vm4, %v2137_v55, %v1841_v33  ;;  %v1868_v42 = vmul.f32 %v2141_v63, %v1867_v10 }
 0x6c5   :  { %v1880_v43 = vmul.f32 %v1845_v57, %v2899_v20  ;;  %v1865_v62 = vsel %vm1864_vm6, %v2139_v22, %v1861_v49 }
 0x6c6   :  { %v1882_v4 = vmul.f32 %v1865_v62, %v2901_v54  ;;  %v1869_v44 = vmul.f32 0.5, %v1868_v42 }
 0x6c7   :  { %v1892_v60 = vmul.f32 %v2920_v29, %v1880_v43 }
 0x6c8   :  { %v1894_v39 = vmul.f32 %v2920_v29, %v1882_v4  ;;  %v1870_v58 = vsub.f32 1.5, %v1869_v44 }
 0x6c9   :  { %v1904_v48 = vadd.f32 %v2925_v12, %v1892_v60 }
 0x6ca   :  { %v1906_v19 = vadd.f32 %v2925_v12, %v1894_v39  ;;  %v1871_v46 = vmul.f32 %v2141_v63, %v1870_v58 }
 0x6cb   :  { %1912 = vst.msk [vmem:[#allocation14 + $0x20] sm:$0xff] %vm170_vm0, %v1904_v48 }
 0x6cc   :  { %1914 = vst.msk [vmem:[#allocation14 + $0x30] sm:$0xff] %vm170_vm0, %v1906_v19  ;;  %v1875_v20 = vsel %vm1874_vm9, %v2141_v63, %v1871_v46 }
 0x6cd   :  { %v1883_v54 = vmul.f32 %v1875_v20, %v2910_v61 }
 0x6cf   :  { %v1895_v53 = vmul.f32 %v2920_v29, %v1883_v54 }
 0x6d1   :  { %v1907_v26 = vadd.f32 %v2925_v12, %v1895_v53 }
 0x6d3   :  { %1915 = vst.msk [vmem:[#allocation14 + $0x38] sm:$0xff] %vm170_vm0, %v1907_v26 }
 0x6d4   :  { %1928 = dma.vmem_to_hbm [thread:$0]  %s1921_s8, 1024, %s1923_s26, [#allocation4], %s2353_s17, %s2353_s17, %s2354_s18  }
 0x6d5   :  { %2350 = dma.done.wait [#allocation4], 1024  }
 0x6d6   :  { %2351 = vsyncadd [#allocation4], 4294966272 }
 0x6d7   :  { %1933 = vsyncpa [#allocation3], 1 }
 0x6d8   :  { %1934 = vsyncpa [#allocation6], 1 }
 0x6d9   :  { %1935 = vsyncpa [#allocation9], 1 }
 0x6da   :  { %1936 = vsyncpa [#allocation12], 1 }
 0x6db   :  { %1937 = vsyncpa [#allocation4], 1 }

</bundles_post_ra>
